<compile_context>
chip_gen: v6e
topology: v6e:2x2x1
jax: 0.10.0
libtpu: 0.0.40
codegen_flags: <defaults>
</compile_context>

<pallas_src>
import jax
import jax.numpy as jnp
from jax.experimental import pallas as pl
from jax.experimental.pallas import tpu as pltpu


def _make_pool_kernel(G, Wc, Wo, ck_in, ck_out):
    """Per-block kernel.

    x_ref:   (TR, G * 2 * Wc)  -- G packed vertical row-pairs per kernel row
    sel_ref: (ck_in, ck_out)   -- 0.25/0 horizontal-pair selection matrix
    o_ref:   (TR, G * Wo)      -- pooled rows (lane-dense)
    """
    n_chunks = Wc // ck_in

    def kernel(x_ref, sel_ref, o_ref):
        sel = sel_ref[...]                                     # resident, tiny
        for g in range(G):                                     # static unroll
            base = g * 2 * Wc
            for c in range(n_chunks):
                a = base + c * ck_in
                # Ref-level slices: load only what this piece needs.
                top = x_ref[:, a:a + ck_in].astype(jnp.float32)
                bot = x_ref[:, a + Wc:a + Wc + ck_in].astype(jnp.float32)
                rows = top + bot                               # vertical sum (VPU)
                pooled = jnp.dot(                              # horizontal sum (MXU)
                    rows, sel,
                    preferred_element_type=jnp.float32,
                    precision=jax.lax.Precision.HIGHEST)
                o = g * Wo + c * ck_out
                o_ref[:, o:o + ck_out] = pooled.astype(o_ref.dtype)

    return kernel


def _pick_group(n_pooled_rows, Wo):
    """Row-pairs packed per kernel row so the output row is >= 128 lanes."""
    if Wo >= 128:
        return 1
    g = -(-128 // Wo)                       # ceil(128 / Wo)
    while g > 1 and n_pooled_rows % g != 0:
        g -= 1
    return g


def _pick_row_tile(n_rows, row_bytes, sub_mult, max_tile_bytes=4 * 1024 * 1024):
    """Largest sublane-aligned row tile within the byte budget (cdiv grid)."""
    tr = max(1, max_tile_bytes // max(row_bytes, 1))
    if tr >= n_rows:
        return n_rows                       # single full-dim block
    return max(sub_mult, (tr // sub_mult) * sub_mult)


@jax.jit
def downsample(x):
    """nn.AvgPool2d(kernel_size=2, stride=2) on an NCHW tensor."""
    N, C, H, W = x.shape
    Ho, Wo = H // 2, W // 2
    if Ho == 0 or Wo == 0:
        return jnp.zeros((N, C, Ho, Wo), x.dtype)
    Wc = 2 * Wo
    # PyTorch AvgPool2d floors: drop a trailing row/col when H or W is odd
    # (no-op view when both are even).
    xc = x[:, :, :2 * Ho, :Wc]

    R = N * C * Ho                          # number of pooled output rows
    G = _pick_group(R, Wo)                  # row-pairs packed per kernel row
    R2 = R // G
    x2 = xc.reshape(R2, G * 2 * Wc)         # free row-major reshape

    # Horizontal contraction chunk: cap MXU work at (256 -> 128) for wide rows.
    if Wc > 256 and Wc % 256 == 0:
        ck_in, ck_out = 256, 128
    else:
        ck_in, ck_out = Wc, Wo

    # Selection matrix built once on the host; 1/4 averaging factor folded in.
    ii = jax.lax.broadcasted_iota(jnp.int32, (ck_in, ck_out), 0)
    jj = jax.lax.broadcasted_iota(jnp.int32, (ck_in, ck_out), 1)
    sel = jnp.where(ii // 2 == jj, 0.25, 0.0).astype(jnp.float32)

    itemsize = jnp.dtype(x.dtype).itemsize
    sub_mult = {4: 8, 2: 16, 1: 32}.get(itemsize, 8)
    tr = _pick_row_tile(R2, G * 2 * Wc * itemsize, sub_mult)
    grid = (pl.cdiv(R2, tr),)

    out2 = pl.pallas_call(
        _make_pool_kernel(G, Wc, Wo, ck_in, ck_out),
        out_shape=jax.ShapeDtypeStruct((R2, G * Wo), x.dtype),
        grid_spec=pltpu.PrefetchScalarGridSpec(
            num_scalar_prefetch=0,
            grid=grid,
            in_specs=[
                pl.BlockSpec((tr, G * 2 * Wc), lambda r: (r, 0)),
                pl.BlockSpec((ck_in, ck_out), lambda r: (0, 0)),  # resident sel
            ],
            out_specs=pl.BlockSpec((tr, G * Wo), lambda r: (r, 0)),
        ),
        compiler_params=pltpu.CompilerParams(
            dimension_semantics=("parallel",),
            vmem_limit_bytes=32 * 1024 * 1024,
        ),
    )(x2, sel)

    return out2.reshape(N, C, Ho, Wo)


def _reference(x):
    # Pure-JAX mirror of nn.AvgPool2d(2, 2).
    N, C, H, W = x.shape
    Ho, Wo = H // 2, W // 2
    xc = x[:, :, :2 * Ho, :2 * Wo]
    return xc.reshape(N, C, Ho, 2, Wo, 2).mean(axis=(3, 5)).astype(x.dtype)


if __name__ == "__main__":
    key = jax.random.PRNGKey(0)
    x = jax.random.normal(key, (2, 4, 16, 16), dtype=jnp.float32)

    out = jax.block_until_ready(downsample(x))
    assert out.shape == (2, 4, 8, 8), out.shape

    ref = _reference(x)
    err = float(jnp.max(jnp.abs(out - ref)))
    assert jnp.allclose(out, ref, rtol=1e-5, atol=1e-5), err

    print("KERNEL_OK")
</pallas_src>

<mosaic_0001>
module attributes {stable_mosaic.version = 11 : i64} {
  func.func @kernel(%arg0: i32, %arg1: memref<4x512xf32, #tpu.memory_space<vmem>>, %arg2: memref<16x8xf32, #tpu.memory_space<vmem>>, %arg3: memref<4x128xf32, #tpu.memory_space<vmem>>) attributes {dimension_semantics = [#tpu.dimension_semantics<parallel>], iteration_bounds = array<i64: 1>, scalar_prefetch = 0 : i64, scratch_operands = 0 : i64, tpu.core_type = #tpu.core_type<tc>, window_params = [{transform_indices = @transform_0, window_bounds = array<i64: 4, 512>}, {pipeline_mode = #tpu.pipeline_mode<synchronous>, transform_indices = @transform_1, window_bounds = array<i64: 16, 8>}, {transform_indices = @transform_2, window_bounds = array<i64: 4, 128>}]} {
    %c0 = arith.constant 0 : index
    %c0_0 = arith.constant 0 : index
    %0 = vector.load %arg2[%c0, %c0_0] : memref<16x8xf32, #tpu.memory_space<vmem>>, vector<16x8xf32>
    %c0_1 = arith.constant 0 : index
    %c0_2 = arith.constant 0 : index
    %1 = vector.load %arg1[%c0_1, %c0_2] : memref<4x512xf32, #tpu.memory_space<vmem>>, vector<4x16xf32>
    %c0_3 = arith.constant 0 : index
    %c16 = arith.constant 16 : index
    %2 = vector.load %arg1[%c0_3, %c16] : memref<4x512xf32, #tpu.memory_space<vmem>>, vector<4x16xf32>
    %3 = arith.addf %1, %2 : vector<4x16xf32>
    %cst = arith.constant dense<0.000000e+00> : vector<4x8xf32>
    %4 = tpu.matmul %3, %0, %cst {dimension_numbers = #tpu.dot_dimension_numbers<[1], [0], [0], [1], [0, 0, 1, 1], [], []>, precision = #tpu.contract_precision<fp32>} : vector<4x16xf32>, vector<16x8xf32>, vector<4x8xf32> -> vector<4x8xf32>
    %c0_4 = arith.constant 0 : index
    %c0_5 = arith.constant 0 : index
    %5 = vector.load %arg3[%c0_4, %c0_5] : memref<4x128xf32, #tpu.memory_space<vmem>>, vector<4x8xf32>
    tpu.vector_store %arg3[%c0_4, %c0_5], %4 {strides = array<i32>} : memref<4x128xf32, #tpu.memory_space<vmem>>, vector<4x8xf32>,
    %c0_6 = arith.constant 0 : index
    %c32 = arith.constant 32 : index
    %6 = vector.load %arg1[%c0_6, %c32] : memref<4x512xf32, #tpu.memory_space<vmem>>, vector<4x16xf32>
    %c0_7 = arith.constant 0 : index
    %c48 = arith.constant 48 : index
    %7 = vector.load %arg1[%c0_7, %c48] : memref<4x512xf32, #tpu.memory_space<vmem>>, vector<4x16xf32>
    %8 = arith.addf %6, %7 : vector<4x16xf32>
    %cst_8 = arith.constant dense<0.000000e+00> : vector<4x8xf32>
    %9 = tpu.matmul %8, %0, %cst_8 {dimension_numbers = #tpu.dot_dimension_numbers<[1], [0], [0], [1], [0, 0, 1, 1], [], []>, precision = #tpu.contract_precision<fp32>} : vector<4x16xf32>, vector<16x8xf32>, vector<4x8xf32> -> vector<4x8xf32>
    %c0_9 = arith.constant 0 : index
    %c8 = arith.constant 8 : index
    %10 = vector.load %arg3[%c0_9, %c8] : memref<4x128xf32, #tpu.memory_space<vmem>>, vector<4x8xf32>
    tpu.vector_store %arg3[%c0_9, %c8], %9 {strides = array<i32>} : memref<4x128xf32, #tpu.memory_space<vmem>>, vector<4x8xf32>,
    %c0_10 = arith.constant 0 : index
    %c64 = arith.constant 64 : index
    %11 = vector.load %arg1[%c0_10, %c64] : memref<4x512xf32, #tpu.memory_space<vmem>>, vector<4x16xf32>
    %c0_11 = arith.constant 0 : index
    %c80 = arith.constant 80 : index
    %12 = vector.load %arg1[%c0_11, %c80] : memref<4x512xf32, #tpu.memory_space<vmem>>, vector<4x16xf32>
    %13 = arith.addf %11, %12 : vector<4x16xf32>
    %cst_12 = arith.constant dense<0.000000e+00> : vector<4x8xf32>
    %14 = tpu.matmul %13, %0, %cst_12 {dimension_numbers = #tpu.dot_dimension_numbers<[1], [0], [0], [1], [0, 0, 1, 1], [], []>, precision = #tpu.contract_precision<fp32>} : vector<4x16xf32>, vector<16x8xf32>, vector<4x8xf32> -> vector<4x8xf32>
    %c0_13 = arith.constant 0 : index
    %c16_14 = arith.constant 16 : index
    %15 = vector.load %arg3[%c0_13, %c16_14] : memref<4x128xf32, #tpu.memory_space<vmem>>, vector<4x8xf32>
    tpu.vector_store %arg3[%c0_13, %c16_14], %14 {strides = array<i32>} : memref<4x128xf32, #tpu.memory_space<vmem>>, vector<4x8xf32>,
    %c0_15 = arith.constant 0 : index
    %c96 = arith.constant 96 : index
    %16 = vector.load %arg1[%c0_15, %c96] : memref<4x512xf32, #tpu.memory_space<vmem>>, vector<4x16xf32>
    %c0_16 = arith.constant 0 : index
    %c112 = arith.constant 112 : index
    %17 = vector.load %arg1[%c0_16, %c112] : memref<4x512xf32, #tpu.memory_space<vmem>>, vector<4x16xf32>
    %18 = arith.addf %16, %17 : vector<4x16xf32>
    %cst_17 = arith.constant dense<0.000000e+00> : vector<4x8xf32>
    %19 = tpu.matmul %18, %0, %cst_17 {dimension_numbers = #tpu.dot_dimension_numbers<[1], [0], [0], [1], [0, 0, 1, 1], [], []>, precision = #tpu.contract_precision<fp32>} : vector<4x16xf32>, vector<16x8xf32>, vector<4x8xf32> -> vector<4x8xf32>
    %c0_18 = arith.constant 0 : index
    %c24 = arith.constant 24 : index
    %20 = vector.load %arg3[%c0_18, %c24] : memref<4x128xf32, #tpu.memory_space<vmem>>, vector<4x8xf32>
    tpu.vector_store %arg3[%c0_18, %c24], %19 {strides = array<i32>} : memref<4x128xf32, #tpu.memory_space<vmem>>, vector<4x8xf32>,
    %c0_19 = arith.constant 0 : index
    %c128 = arith.constant 128 : index
    %21 = vector.load %arg1[%c0_19, %c128] : memref<4x512xf32, #tpu.memory_space<vmem>>, vector<4x16xf32>
    %c0_20 = arith.constant 0 : index
    %c144 = arith.constant 144 : index
    %22 = vector.load %arg1[%c0_20, %c144] : memref<4x512xf32, #tpu.memory_space<vmem>>, vector<4x16xf32>
    %23 = arith.addf %21, %22 : vector<4x16xf32>
    %cst_21 = arith.constant dense<0.000000e+00> : vector<4x8xf32>
    %24 = tpu.matmul %23, %0, %cst_21 {dimension_numbers = #tpu.dot_dimension_numbers<[1], [0], [0], [1], [0, 0, 1, 1], [], []>, precision = #tpu.contract_precision<fp32>} : vector<4x16xf32>, vector<16x8xf32>, vector<4x8xf32> -> vector<4x8xf32>
    %c0_22 = arith.constant 0 : index
    %c32_23 = arith.constant 32 : index
    %25 = vector.load %arg3[%c0_22, %c32_23] : memref<4x128xf32, #tpu.memory_space<vmem>>, vector<4x8xf32>
    tpu.vector_store %arg3[%c0_22, %c32_23], %24 {strides = array<i32>} : memref<4x128xf32, #tpu.memory_space<vmem>>, vector<4x8xf32>,
    %c0_24 = arith.constant 0 : index
    %c160 = arith.constant 160 : index
    %26 = vector.load %arg1[%c0_24, %c160] : memref<4x512xf32, #tpu.memory_space<vmem>>, vector<4x16xf32>
    %c0_25 = arith.constant 0 : index
    %c176 = arith.constant 176 : index
    %27 = vector.load %arg1[%c0_25, %c176] : memref<4x512xf32, #tpu.memory_space<vmem>>, vector<4x16xf32>
    %28 = arith.addf %26, %27 : vector<4x16xf32>
    %cst_26 = arith.constant dense<0.000000e+00> : vector<4x8xf32>
    %29 = tpu.matmul %28, %0, %cst_26 {dimension_numbers = #tpu.dot_dimension_numbers<[1], [0], [0], [1], [0, 0, 1, 1], [], []>, precision = #tpu.contract_precision<fp32>} : vector<4x16xf32>, vector<16x8xf32>, vector<4x8xf32> -> vector<4x8xf32>
    %c0_27 = arith.constant 0 : index
    %c40 = arith.constant 40 : index
    %30 = vector.load %arg3[%c0_27, %c40] : memref<4x128xf32, #tpu.memory_space<vmem>>, vector<4x8xf32>
    tpu.vector_store %arg3[%c0_27, %c40], %29 {strides = array<i32>} : memref<4x128xf32, #tpu.memory_space<vmem>>, vector<4x8xf32>,
    %c0_28 = arith.constant 0 : index
    %c192 = arith.constant 192 : index
    %31 = vector.load %arg1[%c0_28, %c192] : memref<4x512xf32, #tpu.memory_space<vmem>>, vector<4x16xf32>
    %c0_29 = arith.constant 0 : index
    %c208 = arith.constant 208 : index
    %32 = vector.load %arg1[%c0_29, %c208] : memref<4x512xf32, #tpu.memory_space<vmem>>, vector<4x16xf32>
    %33 = arith.addf %31, %32 : vector<4x16xf32>
    %cst_30 = arith.constant dense<0.000000e+00> : vector<4x8xf32>
    %34 = tpu.matmul %33, %0, %cst_30 {dimension_numbers = #tpu.dot_dimension_numbers<[1], [0], [0], [1], [0, 0, 1, 1], [], []>, precision = #tpu.contract_precision<fp32>} : vector<4x16xf32>, vector<16x8xf32>, vector<4x8xf32> -> vector<4x8xf32>
    %c0_31 = arith.constant 0 : index
    %c48_32 = arith.constant 48 : index
    %35 = vector.load %arg3[%c0_31, %c48_32] : memref<4x128xf32, #tpu.memory_space<vmem>>, vector<4x8xf32>
    tpu.vector_store %arg3[%c0_31, %c48_32], %34 {strides = array<i32>} : memref<4x128xf32, #tpu.memory_space<vmem>>, vector<4x8xf32>,
    %c0_33 = arith.constant 0 : index
    %c224 = arith.constant 224 : index
    %36 = vector.load %arg1[%c0_33, %c224] : memref<4x512xf32, #tpu.memory_space<vmem>>, vector<4x16xf32>
    %c0_34 = arith.constant 0 : index
    %c240 = arith.constant 240 : index
    %37 = vector.load %arg1[%c0_34, %c240] : memref<4x512xf32, #tpu.memory_space<vmem>>, vector<4x16xf32>
    %38 = arith.addf %36, %37 : vector<4x16xf32>
    %cst_35 = arith.constant dense<0.000000e+00> : vector<4x8xf32>
    %39 = tpu.matmul %38, %0, %cst_35 {dimension_numbers = #tpu.dot_dimension_numbers<[1], [0], [0], [1], [0, 0, 1, 1], [], []>, precision = #tpu.contract_precision<fp32>} : vector<4x16xf32>, vector<16x8xf32>, vector<4x8xf32> -> vector<4x8xf32>
    %c0_36 = arith.constant 0 : index
    %c56 = arith.constant 56 : index
    %40 = vector.load %arg3[%c0_36, %c56] : memref<4x128xf32, #tpu.memory_space<vmem>>, vector<4x8xf32>
    tpu.vector_store %arg3[%c0_36, %c56], %39 {strides = array<i32>} : memref<4x128xf32, #tpu.memory_space<vmem>>, vector<4x8xf32>,
    %c0_37 = arith.constant 0 : index
    %c256 = arith.constant 256 : index
    %41 = vector.load %arg1[%c0_37, %c256] : memref<4x512xf32, #tpu.memory_space<vmem>>, vector<4x16xf32>
    %c0_38 = arith.constant 0 : index
    %c272 = arith.constant 272 : index
    %42 = vector.load %arg1[%c0_38, %c272] : memref<4x512xf32, #tpu.memory_space<vmem>>, vector<4x16xf32>
    %43 = arith.addf %41, %42 : vector<4x16xf32>
    %cst_39 = arith.constant dense<0.000000e+00> : vector<4x8xf32>
    %44 = tpu.matmul %43, %0, %cst_39 {dimension_numbers = #tpu.dot_dimension_numbers<[1], [0], [0], [1], [0, 0, 1, 1], [], []>, precision = #tpu.contract_precision<fp32>} : vector<4x16xf32>, vector<16x8xf32>, vector<4x8xf32> -> vector<4x8xf32>
    %c0_40 = arith.constant 0 : index
    %c64_41 = arith.constant 64 : index
    %45 = vector.load %arg3[%c0_40, %c64_41] : memref<4x128xf32, #tpu.memory_space<vmem>>, vector<4x8xf32>
    tpu.vector_store %arg3[%c0_40, %c64_41], %44 {strides = array<i32>} : memref<4x128xf32, #tpu.memory_space<vmem>>, vector<4x8xf32>,
    %c0_42 = arith.constant 0 : index
    %c288 = arith.constant 288 : index
    %46 = vector.load %arg1[%c0_42, %c288] : memref<4x512xf32, #tpu.memory_space<vmem>>, vector<4x16xf32>
    %c0_43 = arith.constant 0 : index
    %c304 = arith.constant 304 : index
    %47 = vector.load %arg1[%c0_43, %c304] : memref<4x512xf32, #tpu.memory_space<vmem>>, vector<4x16xf32>
    %48 = arith.addf %46, %47 : vector<4x16xf32>
    %cst_44 = arith.constant dense<0.000000e+00> : vector<4x8xf32>
    %49 = tpu.matmul %48, %0, %cst_44 {dimension_numbers = #tpu.dot_dimension_numbers<[1], [0], [0], [1], [0, 0, 1, 1], [], []>, precision = #tpu.contract_precision<fp32>} : vector<4x16xf32>, vector<16x8xf32>, vector<4x8xf32> -> vector<4x8xf32>
    %c0_45 = arith.constant 0 : index
    %c72 = arith.constant 72 : index
    %50 = vector.load %arg3[%c0_45, %c72] : memref<4x128xf32, #tpu.memory_space<vmem>>, vector<4x8xf32>
    tpu.vector_store %arg3[%c0_45, %c72], %49 {strides = array<i32>} : memref<4x128xf32, #tpu.memory_space<vmem>>, vector<4x8xf32>,
    %c0_46 = arith.constant 0 : index
    %c320 = arith.constant 320 : index
    %51 = vector.load %arg1[%c0_46, %c320] : memref<4x512xf32, #tpu.memory_space<vmem>>, vector<4x16xf32>
    %c0_47 = arith.constant 0 : index
    %c336 = arith.constant 336 : index
    %52 = vector.load %arg1[%c0_47, %c336] : memref<4x512xf32, #tpu.memory_space<vmem>>, vector<4x16xf32>
    %53 = arith.addf %51, %52 : vector<4x16xf32>
    %cst_48 = arith.constant dense<0.000000e+00> : vector<4x8xf32>
    %54 = tpu.matmul %53, %0, %cst_48 {dimension_numbers = #tpu.dot_dimension_numbers<[1], [0], [0], [1], [0, 0, 1, 1], [], []>, precision = #tpu.contract_precision<fp32>} : vector<4x16xf32>, vector<16x8xf32>, vector<4x8xf32> -> vector<4x8xf32>
    %c0_49 = arith.constant 0 : index
    %c80_50 = arith.constant 80 : index
    %55 = vector.load %arg3[%c0_49, %c80_50] : memref<4x128xf32, #tpu.memory_space<vmem>>, vector<4x8xf32>
    tpu.vector_store %arg3[%c0_49, %c80_50], %54 {strides = array<i32>} : memref<4x128xf32, #tpu.memory_space<vmem>>, vector<4x8xf32>,
    %c0_51 = arith.constant 0 : index
    %c352 = arith.constant 352 : index
    %56 = vector.load %arg1[%c0_51, %c352] : memref<4x512xf32, #tpu.memory_space<vmem>>, vector<4x16xf32>
    %c0_52 = arith.constant 0 : index
    %c368 = arith.constant 368 : index
    %57 = vector.load %arg1[%c0_52, %c368] : memref<4x512xf32, #tpu.memory_space<vmem>>, vector<4x16xf32>
    %58 = arith.addf %56, %57 : vector<4x16xf32>
    %cst_53 = arith.constant dense<0.000000e+00> : vector<4x8xf32>
    %59 = tpu.matmul %58, %0, %cst_53 {dimension_numbers = #tpu.dot_dimension_numbers<[1], [0], [0], [1], [0, 0, 1, 1], [], []>, precision = #tpu.contract_precision<fp32>} : vector<4x16xf32>, vector<16x8xf32>, vector<4x8xf32> -> vector<4x8xf32>
    %c0_54 = arith.constant 0 : index
    %c88 = arith.constant 88 : index
    %60 = vector.load %arg3[%c0_54, %c88] : memref<4x128xf32, #tpu.memory_space<vmem>>, vector<4x8xf32>
    tpu.vector_store %arg3[%c0_54, %c88], %59 {strides = array<i32>} : memref<4x128xf32, #tpu.memory_space<vmem>>, vector<4x8xf32>,
    %c0_55 = arith.constant 0 : index
    %c384 = arith.constant 384 : index
    %61 = vector.load %arg1[%c0_55, %c384] : memref<4x512xf32, #tpu.memory_space<vmem>>, vector<4x16xf32>
    %c0_56 = arith.constant 0 : index
    %c400 = arith.constant 400 : index
    %62 = vector.load %arg1[%c0_56, %c400] : memref<4x512xf32, #tpu.memory_space<vmem>>, vector<4x16xf32>
    %63 = arith.addf %61, %62 : vector<4x16xf32>
    %cst_57 = arith.constant dense<0.000000e+00> : vector<4x8xf32>
    %64 = tpu.matmul %63, %0, %cst_57 {dimension_numbers = #tpu.dot_dimension_numbers<[1], [0], [0], [1], [0, 0, 1, 1], [], []>, precision = #tpu.contract_precision<fp32>} : vector<4x16xf32>, vector<16x8xf32>, vector<4x8xf32> -> vector<4x8xf32>
    %c0_58 = arith.constant 0 : index
    %c96_59 = arith.constant 96 : index
    %65 = vector.load %arg3[%c0_58, %c96_59] : memref<4x128xf32, #tpu.memory_space<vmem>>, vector<4x8xf32>
    tpu.vector_store %arg3[%c0_58, %c96_59], %64 {strides = array<i32>} : memref<4x128xf32, #tpu.memory_space<vmem>>, vector<4x8xf32>,
    %c0_60 = arith.constant 0 : index
    %c416 = arith.constant 416 : index
    %66 = vector.load %arg1[%c0_60, %c416] : memref<4x512xf32, #tpu.memory_space<vmem>>, vector<4x16xf32>
    %c0_61 = arith.constant 0 : index
    %c432 = arith.constant 432 : index
    %67 = vector.load %arg1[%c0_61, %c432] : memref<4x512xf32, #tpu.memory_space<vmem>>, vector<4x16xf32>
    %68 = arith.addf %66, %67 : vector<4x16xf32>
    %cst_62 = arith.constant dense<0.000000e+00> : vector<4x8xf32>
    %69 = tpu.matmul %68, %0, %cst_62 {dimension_numbers = #tpu.dot_dimension_numbers<[1], [0], [0], [1], [0, 0, 1, 1], [], []>, precision = #tpu.contract_precision<fp32>} : vector<4x16xf32>, vector<16x8xf32>, vector<4x8xf32> -> vector<4x8xf32>
    %c0_63 = arith.constant 0 : index
    %c104 = arith.constant 104 : index
    %70 = vector.load %arg3[%c0_63, %c104] : memref<4x128xf32, #tpu.memory_space<vmem>>, vector<4x8xf32>
    tpu.vector_store %arg3[%c0_63, %c104], %69 {strides = array<i32>} : memref<4x128xf32, #tpu.memory_space<vmem>>, vector<4x8xf32>,
    %c0_64 = arith.constant 0 : index
    %c448 = arith.constant 448 : index
    %71 = vector.load %arg1[%c0_64, %c448] : memref<4x512xf32, #tpu.memory_space<vmem>>, vector<4x16xf32>
    %c0_65 = arith.constant 0 : index
    %c464 = arith.constant 464 : index
    %72 = vector.load %arg1[%c0_65, %c464] : memref<4x512xf32, #tpu.memory_space<vmem>>, vector<4x16xf32>
    %73 = arith.addf %71, %72 : vector<4x16xf32>
    %cst_66 = arith.constant dense<0.000000e+00> : vector<4x8xf32>
    %74 = tpu.matmul %73, %0, %cst_66 {dimension_numbers = #tpu.dot_dimension_numbers<[1], [0], [0], [1], [0, 0, 1, 1], [], []>, precision = #tpu.contract_precision<fp32>} : vector<4x16xf32>, vector<16x8xf32>, vector<4x8xf32> -> vector<4x8xf32>
    %c0_67 = arith.constant 0 : index
    %c112_68 = arith.constant 112 : index
    %75 = vector.load %arg3[%c0_67, %c112_68] : memref<4x128xf32, #tpu.memory_space<vmem>>, vector<4x8xf32>
    tpu.vector_store %arg3[%c0_67, %c112_68], %74 {strides = array<i32>} : memref<4x128xf32, #tpu.memory_space<vmem>>, vector<4x8xf32>,
    %c0_69 = arith.constant 0 : index
    %c480 = arith.constant 480 : index
    %76 = vector.load %arg1[%c0_69, %c480] : memref<4x512xf32, #tpu.memory_space<vmem>>, vector<4x16xf32>
    %c0_70 = arith.constant 0 : index
    %c496 = arith.constant 496 : index
    %77 = vector.load %arg1[%c0_70, %c496] : memref<4x512xf32, #tpu.memory_space<vmem>>, vector<4x16xf32>
    %78 = arith.addf %76, %77 : vector<4x16xf32>
    %cst_71 = arith.constant dense<0.000000e+00> : vector<4x8xf32>
    %79 = tpu.matmul %78, %0, %cst_71 {dimension_numbers = #tpu.dot_dimension_numbers<[1], [0], [0], [1], [0, 0, 1, 1], [], []>, precision = #tpu.contract_precision<fp32>} : vector<4x16xf32>, vector<16x8xf32>, vector<4x8xf32> -> vector<4x8xf32>
    %c0_72 = arith.constant 0 : index
    %c120 = arith.constant 120 : index
    %80 = vector.load %arg3[%c0_72, %c120] : memref<4x128xf32, #tpu.memory_space<vmem>>, vector<4x8xf32>
    tpu.vector_store %arg3[%c0_72, %c120], %79 {strides = array<i32>} : memref<4x128xf32, #tpu.memory_space<vmem>>, vector<4x8xf32>,
    return
  }
  func.func @transform_0(%arg0: i32) -> (i32, i32) {
    %c0_i32 = arith.constant 0 : i32
    %c0_i32_0 = arith.constant 0 : i32
    return %arg0, %c0_i32 : i32, i32
  }
  func.func @transform_1(%arg0: i32) -> (i32, i32) {
    %c0_i32 = arith.constant 0 : i32
    %c0_i32_0 = arith.constant 0 : i32
    %c0_i32_1 = arith.constant 0 : i32
    return %c0_i32, %c0_i32_0 : i32, i32
  }
  func.func @transform_2(%arg0: i32) -> (i32, i32) {
    %c0_i32 = arith.constant 0 : i32
    %c0_i32_0 = arith.constant 0 : i32
    return %arg0, %c0_i32 : i32, i32
  }
}

</mosaic_0001>

<bundles_post_ra>
// kernel: downsample.1
= control target key start
LH: loop header
LB: loop body
LE: loop exit
PB: predicated region body
PF: predicated region fallthrough
CT: control target
= control target key end

     0   :  { %s8599_s13 = smov 112   ;;  %v8600_v8 = vmov 0.0   ;;  %vm8601_vm0 = vmmov 0   ;;  %vm19_vm1 = vcmask 130048   ;;  %s8603_s30 = smov 64   ;;  %vm482_vm2 = vcmask 60416   ;;  %s9568_s0 = inlined_call_operand.vmem [shape: f32[4,512], index: 0, kind: input, shape index: {}]   ;;  %s9569_s1 = inlined_call_operand.vmem [shape: f32[16,8], index: 1, kind: input, shape index: {}]   ;;  %s9570_s2 = inlined_call_operand.vmem [shape: f32[4,128], index: 2, kind: output, shape index: {}]  }
   0x1   :  { %v484_v0 = vld [vmem:[%s9568_s0] sm:$0xf]  ;;  %v2386_v4 = vld [vmem:[%s9568_s0 + $0x4] sm:$0xf]  ;;  %7910 = vmatprep.subr.mxu0 %v8600_v8  ;;  %7917 = vmatprep.subr.mxu1 %v8600_v8  ;;  %v12_v9 = vld [vmem:[%s9569_s1 + $0x8] sm:$0xff]  ;;  %s8604_s3 = smov 32  }
   0x2   :  { %v1436_v1 = vld [vmem:[%s9568_s0] sm:$0xf]  ;;  %486 = vrot.lane.b32.xlu0 %v484_v0, %s8599_s13  ;;  %v2862_v5 = vld [vmem:[%s9568_s0 + $0x4] sm:$0xf]  ;;  %v8675_v11 = vand.u32 4294901760, %v12_v9  ;;  %7914 = vmatprep.mubr.msk.f32.mxu0 %vm8601_vm0, %v8600_v8  ;;  %s8605_s22 = smov 8  }
   0x3   :  { %1438 = vrot.lane.b32.xlu1 %v1436_v1, %s8599_s13  ;;  %v960_v2 = vld [vmem:[%s9568_s0] sm:$0xf]  ;;  %v8658_v6 = vld [vmem:[%s9568_s0 + $0x4] sm:$0xf]  ;;  %7921 = vmatprep.mubr.msk.f32.mxu1 %vm8601_vm0, %v8600_v8  ;;  %v8721_v34 = vld [vmem:[%s9568_s0 + $0x8] sm:$0xf] }
   0x4   :  { %v13_v3 = vld [vmem:[%s9568_s0] sm:$0xf]  ;;  %v8665_v7 = vld [vmem:[%s9568_s0 + $0x4] sm:$0xf]  ;;  %7911 = vmatpush3.msra.mxu0 %v8675_v11  ;;  %v8687_v13 = vsub.f32 %v12_v9, %v8675_v11  ;;  %v8734_v39 = vld [vmem:[%s9568_s0 + $0x8] sm:$0xf] }
   0x5   :  { %v11_v10 = vld [vmem:[%s9569_s1] sm:$0xff]  ;;  %7912 = vmatprep.subr.mxu0 %v8600_v8  ;;  %s8602_s1 = smov 96   ;;  %v8748_v43 = vld [vmem:[%s9568_s0 + $0x8] sm:$0xf]  ;;  %v8753_v44 = vld [vmem:[%s9568_s0 + $0xc] sm:$0xf] }
   0x6   :  { %962 = vrot.lane.b32.xlu0 %v960_v2, %s8599_s13  ;;  %v8677_v12 = vand.u32 4294901760, %v11_v10  ;;  %v8694_v15 = vand.u32 4294901760, %v8687_v13  ;;  %v8768_v45 = vld [vmem:[%s9568_s0 + $0xc] sm:$0xf]  ;;  %v8773_v46 = vld [vmem:[%s9568_s0 + $0x8] sm:$0xf] }
   0x7   :  { %15 = vrot.lane.b32.xlu1 %v13_v3, %s8599_s13  ;;  %v8788_v47 = vld [vmem:[%s9568_s0 + $0xc] sm:$0xf]  ;;  %s8606_s23 = smov 16   ;;  %s8607_s24 = smov 24   ;;  %vm958_vm3 = vcmask 126016   ;;  %vm1434_vm4 = vcmask 191616  }
   0x8   :  { %v8690_v14 = vsub.f32 %v11_v10, %v8677_v12  ;;  %7913 = vmatpush3.msra.mxu0 %v8677_v12  ;;  %v132_v17 = vsub.f32 %v8687_v13, %v8694_v15  ;;  %v8809_v48 = vld [vmem:[%s9568_s0 + $0xc] sm:$0xf]  ;;  %s8608_s25 = smov 40   ;;  %s8609_s26 = smov 48   ;;  %vm1910_vm5 = vcmask 257216   ;;  %vm2384_vm6 = vcmask 322816  }
   0x9   :  { %7924 = vmatprep.subr.mxu0 %v8600_v8  ;;  %s8610_s27 = smov 56   ;;  %s8611_s28 = smov 72   ;;  %vm2860_vm7 = vcmask 388416   ;;  %vm3336_vm8 = vcmask 454016   ;;  %vm3812_vm9 = vcmask 519616   ;;  %vm4286_vm10 = vcmask 585216  }
   0xa   :  { %2388 = vrot.lane.b32.xlu0 %v2386_v4, %s8599_s13  ;;  %v8698_v16 = vand.u32 4294901760, %v8690_v14  ;;  %v8705_v19 = vand.u32 4294901760, %v132_v17  ;;  %s8612_s5 = smov 80   ;;  %s8613_s10 = smov 88   ;;  %vm4762_vm11 = vcmask 650816   ;;  %vm5238_vm12 = vcmask 716416  }
   0xb   :  { %s8615_s20 = smov 120   ;;  %vm5714_vm13 = vcmask 782016   ;;  %vm6188_vm14 = vcmask 847616   ;;  %vm6664_vm15 = vcmask 913216  }
   0xc   :  { %v139_v18 = vsub.f32 %v8690_v14, %v8698_v16  ;;  %7918 = vmatpush3.msra.mxu1 %v8705_v19 }
   0xd   :  { %7919 = vmatprep.subr.mxu1 %v8600_v8 }
   0xe   :  { %2864 = vrot.lane.b32.xlu0 %v2862_v5, %s8599_s13  ;;  %v8707_v20 = vand.u32 4294901760, %v139_v18 }
  0x10   :  { %7920 = vmatpush3.msra.mxu1 %v8707_v20 }
  0x11   :  { %7931 = vmatprep.subr.mxu1 %v8600_v8 }
  0x12   :  { %3340 = vrot.lane.b32.xlu0 %v8658_v6, %s8599_s13 }
  0x16   :  { %1914 = vrot.lane.b32.xlu0 %v8665_v7, %s8599_s13 }
  0x74   :  { %v487_v21 = vpop.permute.xlu0 %486 }
  0x75   :  { %v1439_v22 = vpop.permute.xlu1 %1438  ;;  %v489_v23 = vadd.f32 %v487_v21, %v484_v0 }
  0x76   :  { %v1441_v28 = vadd.f32 %v1439_v22, %v1436_v1 }
  0x77   :  { %491 = vrot.lane.b32.xlu1 %v489_v23, %s8602_s1 }
  0x78   :  { %v963_v24 = vpop.permute.xlu0 %962 }
  0x79   :  { %v16_v25 = vpop.permute.xlu1 %15  ;;  %v965_v26 = vadd.f32 %v963_v24, %v960_v2 }
  0x7a   :  { %v18_v27 = vadd.f32 %v16_v25, %v13_v3 }
  0x7b   :  { %967 = vrot.lane.b32.xlu1 %v965_v26, %s8603_s30 }
  0x7c   :  { %v21_v29 = vsel %vm19_vm1, %v18_v27, 0  ;;  %v2389_v30 = vpop.permute.xlu0 %2388 }
  0x7d   :  { %v90_v31 = vand.u32 4294901760, %v21_v29  ;;  %v2391_v32 = vadd.f32 %v2389_v30, %v2386_v4 }
  0x7f   :  { %v91_v33 = vsub.f32 %v21_v29, %v90_v31  ;;  %7922 = vmatmul.mubr.f32.vlgmr.msra.gmra.mxu1 %v90_v31  ;;  %1443 = vrot.lane.b32.xlu1 %v1441_v28, %s8604_s3 }
  0x80   :  { %2393 = vrot.lane.b32.xlu0 %v2391_v32, %s8602_s1  ;;  %v2865_v35 = vpop.permute.xlu0 %2864  ;;  %7932 = vmatpush3.msra.mxu1 %v8675_v11 }
  0x81   :  { %v92_v36 = vand.u32 4294901760, %v91_v33  ;;  %7935 = vmatprep.mubr.msk.f32.mxu1 %vm8601_vm0, %v8600_v8  ;;  %v2867_v37 = vadd.f32 %v2865_v35, %v2862_v5  ;;  %7933 = vmatprep.subr.mxu1 %v8600_v8 }
  0x82   :  { %7934 = vmatpush3.msra.mxu1 %v8677_v12 }
  0x83   :  { %v93_v38 = vsub.f32 %v91_v33, %v92_v36  ;;  %4290 = vrot.lane.b32.xlu1 %v8721_v34, %s8599_s13  ;;  %7936 = vmatmul.mubr.f32.vlgmr.msra.gmra.mxu1 %v92_v36 }
  0x84   :  { %2869 = vrot.lane.b32.xlu0 %v2867_v37, %s8603_s30  ;;  %v3341_v40 = vpop.permute.xlu0 %3340  ;;  %7945 = vmatprep.subr.mxu1 %v8600_v8 }
  0x85   :  { %v94_v41 = vand.u32 4294901760, %v93_v38  ;;  %v3343_v42 = vadd.f32 %v3341_v40, %v8658_v6  ;;  %7946 = vmatpush3.msra.mxu1 %v8675_v11  ;;  %7949 = vmatprep.mubr.msk.f32.mxu1 %vm8601_vm0, %v8600_v8 }
  0x86   :  { %7947 = vmatprep.subr.mxu1 %v8600_v8 }
  0x87   :  { %7915 = vmatmul.mubr.f32.vlgmr.msra.gmra.mxu0 %v94_v41  ;;  %4766 = vrot.lane.b32.xlu1 %v8734_v39, %s8599_s13 }
  0x88   :  { %3345 = vrot.lane.b32.xlu0 %v3343_v42, %s8604_s3  ;;  %7925 = vmatpush3.msra.mxu0 %v8687_v13  ;;  %v1915_v9 = vpop.permute.xlu0 %1914 }
  0x89   :  { %7928 = vmatprep.mubr.msk.f32.mxu0 %vm8601_vm0, %v8600_v8  ;;  %7926 = vmatprep.subr.mxu0 %v8600_v8  ;;  %v1917_v17 = vadd.f32 %v1915_v9, %v8665_v7 }
  0x8a   :  { %7948 = vmatpush3.msra.mxu1 %v8677_v12  ;;  %7927 = vmatpush3.msra.mxu0 %v8690_v14 }
  0x8b   :  { %7950 = vmatmul.mubr.f32.vlgmr.msra.gmra.mxu1 %v90_v31  ;;  %5242 = vrot.lane.b32.xlu1 %v8748_v43, %s8599_s13  ;;  %v1919_v7 = vsel %vm19_vm1, %v1917_v17, 0 }
  0x8c   :  { %6192 = vrot.lane.b32.xlu0 %v8753_v44, %s8599_s13  ;;  %7929 = vmatmul.mubr.f32.vlgmr.msra.gmra.mxu0 %v91_v33  ;;  %v8910_v24 = vand.u32 4294901760, %v1919_v7 }
  0x8d   :  { %7938 = vmatprep.subr.mxu0 %v8600_v8  ;;  %7942 = vmatprep.mubr.msk.f32.mxu0 %vm8601_vm0, %v8600_v8 }
  0x8e   :  { %7939 = vmatpush3.msra.mxu0 %v8694_v15  ;;  %7959 = vmatprep.subr.mxu1 %v8600_v8  ;;  %v1989_v25 = vsub.f32 %v1919_v7, %v8910_v24 }
  0x8f   :  { %7940 = vmatprep.subr.mxu0 %v8600_v8  ;;  %3816 = vrot.lane.b32.xlu1 %v8773_v46, %s8599_s13 }
  0x90   :  { %6668 = vrot.lane.b32.xlu0 %v8768_v45, %s8599_s13  ;;  %7941 = vmatpush3.msra.mxu0 %v8698_v16  ;;  %v1990_v26 = vand.u32 4294901760, %v1989_v25 }
  0x91   :  { %7960 = vmatpush3.msra.mxu1 %v8705_v19  ;;  %7943 = vmatmul.mubr.f32.vlgmr.msra.gmra.mxu0 %v90_v31 }
  0x92   :  { %7961 = vmatprep.subr.mxu1 %v8600_v8  ;;  %7963 = vmatprep.mubr.msk.f32.mxu1 %vm8601_vm0, %v8600_v8  ;;  %v1991_v27 = vsub.f32 %v1989_v25, %v1990_v26 }
  0x93   :  { %7962 = vmatpush3.msra.mxu1 %v8707_v20  ;;  %7952 = vmatprep.subr.mxu0 %v8600_v8 }
  0x94   :  { %7144 = vrot.lane.b32.xlu0 %v8788_v47, %s8599_s13  ;;  %7973 = vmatprep.subr.mxu1 %v8600_v8  ;;  %v1992_v29 = vand.u32 4294901760, %v1991_v27 }
  0x95   :  { %7956 = vmatprep.mubr.msk.f32.mxu0 %vm8601_vm0, %v8600_v8  ;;  %7953 = vmatpush3.msra.mxu0 %v8675_v11 }
  0x96   :  { %7954 = vmatprep.subr.mxu0 %v8600_v8 }
  0x97   :  { %7955 = vmatpush3.msra.mxu0 %v8677_v12 }
  0x98   :  { %7966 = vmatprep.subr.mxu0 %v8600_v8  ;;  %5718 = vrot.lane.b32.xlu0 %v8809_v48, %s8599_s13 }
  0xe9   :  { %v492_v49 = vpop.permute.xlu1 %491 }
  0xea   :  { %v493_v50 = vsel %vm19_vm1, %v492_v49, 0 }
  0xeb   :  { %v562_v51 = vand.u32 4294901760, %v493_v50 }
  0xed   :  { %v563_v52 = vsub.f32 %v493_v50, %v562_v51  ;;  %7964 = vmatmul.mubr.f32.vlgmr.msra.gmra.mxu1 %v562_v51  ;;  %v968_v53 = vpop.permute.xlu1 %967 }
  0xee   :  { %7974 = vmatpush3.msra.mxu1 %v8675_v11  ;;  %7977 = vmatprep.mubr.msk.f32.mxu1 %vm8601_vm0, %v8600_v8  ;;  %v969_v57 = vsel %vm19_vm1, %v968_v53, 0 }
  0xef   :  { %v564_v54 = vand.u32 4294901760, %v563_v52  ;;  %7975 = vmatprep.subr.mxu1 %v8600_v8  ;;  %v8826_v59 = vand.u32 4294901760, %v969_v57 }
  0xf0   :  { %7976 = vmatpush3.msra.mxu1 %v8677_v12 }
  0xf1   :  { %v565_v55 = vsub.f32 %v563_v52, %v564_v54  ;;  %7978 = vmatmul.mubr.f32.vlgmr.msra.gmra.mxu1 %v564_v54  ;;  %7987 = vmatprep.subr.mxu1 %v8600_v8  ;;  %v1444_v56 = vpop.permute.xlu1 %1443  ;;  %v1039_v62 = vsub.f32 %v969_v57, %v8826_v59 }
  0xf2   :  { %7988 = vmatpush3.msra.mxu1 %v8675_v11  ;;  %7991 = vmatprep.mubr.msk.f32.mxu1 %vm8601_vm0, %v8600_v8  ;;  %v1445_v4 = vsel %vm19_vm1, %v1444_v56, 0  ;;  %v2394_v28 = vpop.permute.xlu0 %2393 }
  0xf3   :  { %v566_v58 = vand.u32 4294901760, %v565_v55  ;;  %7989 = vmatprep.subr.mxu1 %v8600_v8  ;;  %v1040_v63 = vand.u32 4294901760, %v1039_v62  ;;  %v8870_v5 = vand.u32 4294901760, %v1445_v4  ;;  %v2395_v30 = vsel %vm19_vm1, %v2394_v28, 0 }
  0xf4   :  { %7990 = vmatpush3.msra.mxu1 %v8677_v12  ;;  %v8959_v32 = vand.u32 4294901760, %v2395_v30 }
  0xf5   :  { %7957 = vmatmul.mubr.f32.vlgmr.msra.gmra.mxu0 %v566_v58  ;;  %7992 = vmatmul.mubr.f32.vlgmr.msra.gmra.mxu1 %v562_v51  ;;  %v4291_v60 = vpop.permute.xlu1 %4290  ;;  %v1041_v1 = vsub.f32 %v1039_v62, %v1040_v63  ;;  %v1515_v6 = vsub.f32 %v1445_v4, %v8870_v5 }
  0xf6   :  { %8001 = vmatprep.subr.mxu1 %v8600_v8  ;;  %v4293_v61 = vadd.f32 %v4291_v60, %v8721_v34  ;;  %7967 = vmatpush3.msra.mxu0 %v8687_v13  ;;  %v2870_v31 = vpop.permute.xlu0 %2869  ;;  %v2465_v33 = vsub.f32 %v2395_v30, %v8959_v32 }
  0xf7   :  { %8002 = vmatpush3.msra.mxu1 %v8705_v19  ;;  %7968 = vmatprep.subr.mxu0 %v8600_v8  ;;  %v1042_v3 = vand.u32 4294901760, %v1041_v1  ;;  %v1516_v10 = vand.u32 4294901760, %v1515_v6  ;;  %v2871_v40 = vsel %vm19_vm1, %v2870_v31, 0 }
  0xf8   :  { %8003 = vmatprep.subr.mxu1 %v8600_v8  ;;  %7969 = vmatpush3.msra.mxu0 %v8690_v14  ;;  %v2466_v35 = vand.u32 4294901760, %v2465_v33  ;;  %v9006_v41 = vand.u32 4294901760, %v2871_v40 }
  0xf9   :  { %7970 = vmatprep.mubr.msk.f32.mxu0 %vm8601_vm0, %v8600_v8  ;;  %8004 = vmatpush3.msra.mxu1 %v8707_v20  ;;  %v4767_v0 = vpop.permute.xlu1 %4766  ;;  %v1517_v21 = vsub.f32 %v1515_v6, %v1516_v10 }
  0xfa   :  { %8005 = vmatprep.mubr.msk.f32.mxu1 %vm8601_vm0, %v8600_v8  ;;  %4295 = vrot.lane.b32.xlu1 %v4293_v61, %s8602_s1  ;;  %v4769_v2 = vadd.f32 %v4767_v0, %v8734_v39  ;;  %v8975_v34 = vpop.permute.xlu0 %3345  ;;  %v2467_v37 = vsub.f32 %v2465_v33, %v2466_v35  ;;  %v9017_v42 = vsub.f32 %v2871_v40, %v9006_v41 }
  0xfb   :  { %7971 = vmatmul.mubr.f32.vlgmr.msra.gmra.mxu0 %v563_v52  ;;  %7980 = vmatprep.subr.mxu0 %v8600_v8  ;;  %v1518_v23 = vand.u32 4294901760, %v1517_v21 }
  0xfc   :  { %8006 = vmatmul.mubr.f32.vlgmr.msra.gmra.mxu1 %v8826_v59  ;;  %8015 = vmatprep.subr.mxu1 %v8600_v8  ;;  %v2468_v39 = vand.u32 4294901760, %v2467_v37 }
  0xfd   :  { %7981 = vmatpush3.msra.mxu0 %v8694_v15  ;;  %8016 = vmatpush3.msra.mxu1 %v8675_v11  ;;  %v5243_v18 = vpop.permute.xlu1 %5242 }
  0xfe   :  { %7982 = vmatprep.subr.mxu0 %v8600_v8  ;;  %8017 = vmatprep.subr.mxu1 %v8600_v8  ;;  %v5245_v22 = vadd.f32 %v5243_v18, %v8748_v43  ;;  %v6193_v36 = vpop.permute.xlu0 %6192 }
  0xff   :  { %7983 = vmatpush3.msra.mxu0 %v8698_v16  ;;  %7984 = vmatprep.mubr.msk.f32.mxu0 %vm8601_vm0, %v8600_v8  ;;  %v6195_v38 = vadd.f32 %v6193_v36, %v8753_v44  ;;  %v2942_v44 = vand.u32 4294901760, %v9017_v42 }
 0x100   :  { %8018 = vmatpush3.msra.mxu1 %v8677_v12  ;;  %8019 = vmatprep.mubr.msk.f32.mxu1 %vm8601_vm0, %v8600_v8 }
 0x101   :  { %7985 = vmatmul.mubr.f32.vlgmr.msra.gmra.mxu0 %v562_v51  ;;  %7994 = vmatprep.subr.mxu0 %v8600_v8  ;;  %v2943_v55 = vsub.f32 %v9017_v42, %v2942_v44  ;;  %v3817_v0 = vpop.permute.xlu1 %3816 }
 0x102   :  { %8020 = vmatmul.mubr.f32.vlgmr.msra.gmra.mxu1 %v1040_v63  ;;  %8029 = vmatprep.subr.mxu1 %v8600_v8  ;;  %v6669_v43 = vpop.permute.xlu0 %6668 }
 0x103   :  { %7995 = vmatpush3.msra.mxu0 %v8675_v11  ;;  %8030 = vmatpush3.msra.mxu1 %v8675_v11  ;;  %v6671_v53 = vadd.f32 %v6669_v43, %v8768_v45  ;;  %v3347_v45 = vsel %vm19_vm1, %v8975_v34, 0 }
 0x104   :  { %7996 = vmatprep.subr.mxu0 %v8600_v8  ;;  %8031 = vmatprep.subr.mxu1 %v8600_v8  ;;  %v9056_v63 = vand.u32 4294901760, %v3347_v45 }
 0x105   :  { %7997 = vmatpush3.msra.mxu0 %v8677_v12  ;;  %7998 = vmatprep.mubr.msk.f32.mxu0 %vm8601_vm0, %v8600_v8 }
 0x106   :  { %8032 = vmatpush3.msra.mxu1 %v8677_v12  ;;  %8033 = vmatprep.mubr.msk.f32.mxu1 %vm8601_vm0, %v8600_v8  ;;  %v3417_v4 = vsub.f32 %v3347_v45, %v9056_v63  ;;  %v7145_v18 = vpop.permute.xlu0 %7144 }
 0x107   :  { %4771 = vrot.lane.b32.xlu1 %v4769_v2, %s8603_s30  ;;  %7999 = vmatmul.mubr.f32.vlgmr.msra.gmra.mxu0 %v1042_v3  ;;  %v7147_v7 = vadd.f32 %v7145_v18, %v8788_v47 }
 0x108   :  { %8008 = vmatprep.subr.mxu0 %v8600_v8  ;;  %8034 = vmatmul.mubr.f32.vlgmr.msra.gmra.mxu1 %v8826_v59 }
 0x109   :  { %8043 = vmatprep.subr.mxu1 %v8600_v8  ;;  %8009 = vmatpush3.msra.mxu0 %v8687_v13 }
 0x10a   :  { %8044 = vmatpush3.msra.mxu1 %v8705_v19  ;;  %8010 = vmatprep.subr.mxu0 %v8600_v8 }
 0x10b   :  { %8045 = vmatprep.subr.mxu1 %v8600_v8  ;;  %8011 = vmatpush3.msra.mxu0 %v8690_v14 }
 0x10c   :  { %8012 = vmatprep.mubr.msk.f32.mxu0 %vm8601_vm0, %v8600_v8  ;;  %8046 = vmatpush3.msra.mxu1 %v8707_v20 }
 0x10d   :  { %8047 = vmatprep.mubr.msk.f32.mxu1 %vm8601_vm0, %v8600_v8  ;;  %8013 = vmatmul.mubr.f32.vlgmr.msra.gmra.mxu0 %v1039_v62 }
 0x10e   :  { %8022 = vmatprep.subr.mxu0 %v8600_v8  ;;  %8048 = vmatmul.mubr.f32.vlgmr.msra.gmra.mxu1 %v8870_v5 }
 0x10f   :  { %8057 = vmatprep.subr.mxu1 %v8600_v8  ;;  %8023 = vmatpush3.msra.mxu0 %v8694_v15 }
 0x110   :  { %8058 = vmatpush3.msra.mxu1 %v8675_v11  ;;  %8024 = vmatprep.subr.mxu0 %v8600_v8 }
 0x111   :  { %8059 = vmatprep.subr.mxu1 %v8600_v8  ;;  %8025 = vmatpush3.msra.mxu0 %v8698_v16 }
 0x112   :  { %8026 = vmatprep.mubr.msk.f32.mxu0 %vm8601_vm0, %v8600_v8  ;;  %8060 = vmatpush3.msra.mxu1 %v8677_v12 }
 0x113   :  { %8061 = vmatprep.mubr.msk.f32.mxu1 %vm8601_vm0, %v8600_v8  ;;  %8027 = vmatmul.mubr.f32.vlgmr.msra.gmra.mxu0 %v8826_v59  ;;  %v2944_v59 = vand.u32 4294901760, %v2943_v55 }
 0x114   :  { %8036 = vmatprep.subr.mxu0 %v8600_v8  ;;  %8062 = vmatmul.mubr.f32.vlgmr.msra.gmra.mxu1 %v1516_v10 }
 0x115   :  { %8071 = vmatprep.subr.mxu1 %v8600_v8  ;;  %8037 = vmatpush3.msra.mxu0 %v8675_v11 }
 0x116   :  { %8072 = vmatpush3.msra.mxu1 %v8675_v11  ;;  %8038 = vmatprep.subr.mxu0 %v8600_v8 }
 0x117   :  { %8073 = vmatprep.subr.mxu1 %v8600_v8  ;;  %8039 = vmatpush3.msra.mxu0 %v8677_v12 }
 0x118   :  { %8040 = vmatprep.mubr.msk.f32.mxu0 %vm8601_vm0, %v8600_v8  ;;  %8074 = vmatpush3.msra.mxu1 %v8677_v12 }
 0x119   :  { %8075 = vmatprep.mubr.msk.f32.mxu1 %vm8601_vm0, %v8600_v8  ;;  %5247 = vrot.lane.b32.xlu1 %v5245_v22, %s8604_s3 }
 0x11a   :  { %8041 = vmatmul.mubr.f32.vlgmr.msra.gmra.mxu0 %v1518_v23  ;;  %8050 = vmatprep.subr.mxu0 %v8600_v8 }
 0x11b   :  { %8076 = vmatmul.mubr.f32.vlgmr.msra.gmra.mxu1 %v8870_v5  ;;  %8085 = vmatprep.subr.mxu1 %v8600_v8 }
 0x11c   :  { %8051 = vmatpush3.msra.mxu0 %v8687_v13  ;;  %8086 = vmatpush3.msra.mxu1 %v8705_v19 }
 0x11d   :  { %8052 = vmatprep.subr.mxu0 %v8600_v8  ;;  %8087 = vmatprep.subr.mxu1 %v8600_v8 }
 0x11e   :  { %8053 = vmatpush3.msra.mxu0 %v8690_v14  ;;  %8054 = vmatprep.mubr.msk.f32.mxu0 %vm8601_vm0, %v8600_v8 }
 0x11f   :  { %8088 = vmatpush3.msra.mxu1 %v8707_v20  ;;  %8089 = vmatprep.mubr.msk.f32.mxu1 %vm8601_vm0, %v8600_v8 }
 0x120   :  { %8055 = vmatmul.mubr.f32.vlgmr.msra.gmra.mxu0 %v1515_v6  ;;  %8064 = vmatprep.subr.mxu0 %v8600_v8 }
 0x121   :  { %8090 = vmatmul.mubr.f32.vlgmr.msra.gmra.mxu1 %v8910_v24  ;;  %8099 = vmatprep.subr.mxu1 %v8600_v8 }
 0x122   :  { %8065 = vmatpush3.msra.mxu0 %v8694_v15  ;;  %8100 = vmatpush3.msra.mxu1 %v8675_v11 }
 0x123   :  { %8066 = vmatprep.subr.mxu0 %v8600_v8  ;;  %8101 = vmatprep.subr.mxu1 %v8600_v8 }
 0x124   :  { %8067 = vmatpush3.msra.mxu0 %v8698_v16  ;;  %8068 = vmatprep.mubr.msk.f32.mxu0 %vm8601_vm0, %v8600_v8 }
 0x125   :  { %8102 = vmatpush3.msra.mxu1 %v8677_v12  ;;  %8103 = vmatprep.mubr.msk.f32.mxu1 %vm8601_vm0, %v8600_v8 }
 0x126   :  { %8069 = vmatmul.mubr.f32.vlgmr.msra.gmra.mxu0 %v8870_v5  ;;  %8078 = vmatprep.subr.mxu0 %v8600_v8  ;;  %v3819_v5 = vadd.f32 %v3817_v0, %v8773_v46  ;;  %v3418_v46 = vand.u32 4294901760, %v3417_v4 }
 0x127   :  { %8104 = vmatmul.mubr.f32.vlgmr.msra.gmra.mxu1 %v1990_v26  ;;  %8113 = vmatprep.subr.mxu1 %v8600_v8 }
 0x128   :  { %8079 = vmatpush3.msra.mxu0 %v8675_v11  ;;  %8114 = vmatpush3.msra.mxu1 %v8675_v11  ;;  %v3821_v17 = vsel %vm19_vm1, %v3819_v5, 0  ;;  %v3419_v22 = vsub.f32 %v3417_v4, %v3418_v46 }
 0x129   :  { %8080 = vmatprep.subr.mxu0 %v8600_v8  ;;  %8115 = vmatprep.subr.mxu1 %v8600_v8  ;;  %v9091_v21 = vand.u32 4294901760, %v3821_v17 }
 0x12a   :  { %8081 = vmatpush3.msra.mxu0 %v8677_v12  ;;  %8082 = vmatprep.mubr.msk.f32.mxu0 %vm8601_vm0, %v8600_v8 }
 0x12b   :  { %8116 = vmatpush3.msra.mxu1 %v8677_v12  ;;  %8117 = vmatprep.mubr.msk.f32.mxu1 %vm8601_vm0, %v8600_v8  ;;  %v3891_v23 = vsub.f32 %v3821_v17, %v9091_v21 }
 0x12c   :  { %8083 = vmatmul.mubr.f32.vlgmr.msra.gmra.mxu0 %v1992_v29  ;;  %8092 = vmatprep.subr.mxu0 %v8600_v8 }
 0x12d   :  { %8118 = vmatmul.mubr.f32.vlgmr.msra.gmra.mxu1 %v8910_v24  ;;  %8127 = vmatprep.subr.mxu1 %v8600_v8  ;;  %v3892_v47 = vand.u32 4294901760, %v3891_v23 }
 0x12e   :  { %8093 = vmatpush3.msra.mxu0 %v8687_v13  ;;  %8128 = vmatpush3.msra.mxu1 %v8705_v19 }
 0x12f   :  { %8094 = vmatprep.subr.mxu0 %v8600_v8  ;;  %8129 = vmatprep.subr.mxu1 %v8600_v8 }
 0x130   :  { %8095 = vmatpush3.msra.mxu0 %v8690_v14  ;;  %8096 = vmatprep.mubr.msk.f32.mxu0 %vm8601_vm0, %v8600_v8 }
 0x131   :  { %8130 = vmatpush3.msra.mxu1 %v8707_v20  ;;  %8131 = vmatprep.mubr.msk.f32.mxu1 %vm8601_vm0, %v8600_v8 }
 0x132   :  { %8097 = vmatmul.mubr.f32.vlgmr.msra.gmra.mxu0 %v1989_v25  ;;  %8106 = vmatprep.subr.mxu0 %v8600_v8  ;;  %v3893_v25 = vsub.f32 %v3891_v23, %v3892_v47 }
 0x133   :  { %8132 = vmatmul.mubr.f32.vlgmr.msra.gmra.mxu1 %v8959_v32  ;;  %8141 = vmatprep.subr.mxu1 %v8600_v8 }
 0x134   :  { %8107 = vmatpush3.msra.mxu0 %v8694_v15  ;;  %8142 = vmatpush3.msra.mxu1 %v8675_v11  ;;  %v3894_v26 = vand.u32 4294901760, %v3893_v25 }
 0x135   :  { %8108 = vmatprep.subr.mxu0 %v8600_v8  ;;  %8143 = vmatprep.subr.mxu1 %v8600_v8 }
 0x136   :  { %8109 = vmatpush3.msra.mxu0 %v8698_v16  ;;  %8110 = vmatprep.mubr.msk.f32.mxu0 %vm8601_vm0, %v8600_v8 }
 0x137   :  { %8144 = vmatpush3.msra.mxu1 %v8677_v12  ;;  %8145 = vmatprep.mubr.msk.f32.mxu1 %vm8601_vm0, %v8600_v8 }
 0x138   :  { %8111 = vmatmul.mubr.f32.vlgmr.msra.gmra.mxu0 %v8910_v24  ;;  %8120 = vmatprep.subr.mxu0 %v8600_v8  ;;  %v3420_v24 = vand.u32 4294901760, %v3419_v22 }
 0x139   :  { %8146 = vmatmul.mubr.f32.vlgmr.msra.gmra.mxu1 %v2466_v35  ;;  %8155 = vmatprep.subr.mxu1 %v8600_v8 }
 0x13a   :  { %8121 = vmatpush3.msra.mxu0 %v8675_v11  ;;  %8156 = vmatpush3.msra.mxu1 %v8675_v11 }
 0x13b   :  { %8122 = vmatprep.subr.mxu0 %v8600_v8  ;;  %8157 = vmatprep.subr.mxu1 %v8600_v8 }
 0x13c   :  { %8123 = vmatpush3.msra.mxu0 %v8677_v12  ;;  %8124 = vmatprep.mubr.msk.f32.mxu0 %vm8601_vm0, %v8600_v8 }
 0x13d   :  { %8158 = vmatpush3.msra.mxu1 %v8677_v12  ;;  %8159 = vmatprep.mubr.msk.f32.mxu1 %vm8601_vm0, %v8600_v8 }
 0x13e   :  { %6197 = vrot.lane.b32.xlu1 %v6195_v38, %s8602_s1  ;;  %8125 = vmatmul.mubr.f32.vlgmr.msra.gmra.mxu0 %v2468_v39 }
 0x13f   :  { %8134 = vmatprep.subr.mxu0 %v8600_v8  ;;  %8160 = vmatmul.mubr.f32.vlgmr.msra.gmra.mxu1 %v8959_v32  ;;  %v177_v50 = vpop.f32.mrf.mxu1 }
 0x140   :  { %8169 = vmatprep.subr.mxu1 %v8600_v8  ;;  %8135 = vmatpush3.msra.mxu0 %v8687_v13 }
 0x141   :  { %8170 = vmatpush3.msra.mxu1 %v8705_v19  ;;  %8136 = vmatprep.subr.mxu0 %v8600_v8  ;;  %v7923_v52 = vpop.f32.mrf.mxu1 }
 0x142   :  { %8171 = vmatprep.subr.mxu1 %v8600_v8  ;;  %8137 = vmatpush3.msra.mxu0 %v8690_v14 }
 0x143   :  { %8138 = vmatprep.mubr.msk.f32.mxu0 %vm8601_vm0, %v8600_v8  ;;  %8172 = vmatpush3.msra.mxu1 %v8707_v20  ;;  %v328_v57 = vpop.f32.mrf.mxu1 }
 0x144   :  { %8173 = vmatprep.mubr.msk.f32.mxu1 %vm8601_vm0, %v8600_v8  ;;  %8139 = vmatmul.mubr.f32.vlgmr.msra.gmra.mxu0 %v2465_v33 }
 0x145   :  { %8148 = vmatprep.subr.mxu0 %v8600_v8  ;;  %8174 = vmatmul.mubr.f32.vlgmr.msra.gmra.mxu1 %v9006_v41  ;;  %v7937_v61 = vpop.f32.mrf.mxu1 }
 0x146   :  { %8183 = vmatprep.subr.mxu1 %v8600_v8  ;;  %8149 = vmatpush3.msra.mxu0 %v8694_v15 }
 0x147   :  { %8184 = vmatpush3.msra.mxu1 %v8675_v11  ;;  %8150 = vmatprep.subr.mxu0 %v8600_v8  ;;  %v96_v49 = vpop.f32.mrf.mxu0 }
 0x148   :  { %8185 = vmatprep.subr.mxu1 %v8600_v8  ;;  %8151 = vmatpush3.msra.mxu0 %v8698_v16  ;;  %v178_v54 = vadd.f32 %v177_v50, %v96_v49  ;;  %v5719_v50 = vpop.permute.xlu0 %5718 }
 0x149   :  { %8152 = vmatprep.mubr.msk.f32.mxu0 %vm8601_vm0, %v8600_v8  ;;  %8186 = vmatpush3.msra.mxu1 %v8677_v12  ;;  %v7916_v51 = vpop.f32.mrf.mxu0 }
 0x14a   :  { %8187 = vmatprep.mubr.msk.f32.mxu1 %vm8601_vm0, %v8600_v8  ;;  %8153 = vmatmul.mubr.f32.vlgmr.msra.gmra.mxu0 %v8959_v32  ;;  %v5721_v51 = vadd.f32 %v5719_v50, %v8809_v48 }
 0x14b   :  { %8162 = vmatprep.subr.mxu0 %v8600_v8  ;;  %8188 = vmatmul.mubr.f32.vlgmr.msra.gmra.mxu1 %v2942_v44  ;;  %v478_v2 = vpop.f32.mrf.mxu1 }
 0x14c   :  { %8197 = vmatprep.subr.mxu1 %v8600_v8  ;;  %8163 = vmatpush3.msra.mxu0 %v8675_v11  ;;  %v253_v56 = vpop.f32.mrf.mxu0 }
 0x14d   :  { %8198 = vmatpush3.msra.mxu1 %v8675_v11  ;;  %8164 = vmatprep.subr.mxu0 %v8600_v8  ;;  %v254_v58 = vadd.f32 %v253_v56, %v178_v54  ;;  %v7951_v9 = vpop.f32.mrf.mxu1 }
 0x14e   :  { %8199 = vmatprep.subr.mxu1 %v8600_v8  ;;  %6673 = vrot.lane.b32.xlu0 %v6671_v53, %s8603_s30  ;;  %v7930_v60 = vpop.f32.mrf.mxu0  ;;  %v5723_v53 = vsel %vm19_vm1, %v5721_v51, 0 }
 0x14f   :  { %8165 = vmatpush3.msra.mxu0 %v8677_v12  ;;  %8166 = vmatprep.mubr.msk.f32.mxu0 %vm8601_vm0, %v8600_v8  ;;  %v329_v62 = vadd.f32 %v328_v57, %v254_v58  ;;  %v9280_v54 = vand.u32 4294901760, %v5723_v53 }
 0x150   :  { %8200 = vmatpush3.msra.mxu1 %v8677_v12  ;;  %8201 = vmatprep.mubr.msk.f32.mxu1 %vm8601_vm0, %v8600_v8 }
 0x151   :  { %8167 = vmatmul.mubr.f32.vlgmr.msra.gmra.mxu0 %v2944_v59  ;;  %8176 = vmatprep.subr.mxu0 %v8600_v8  ;;  %v405_v1 = vpop.f32.mrf.mxu0  ;;  %v5793_v57 = vsub.f32 %v5723_v53, %v9280_v54 }
 0x152   :  { %8202 = vmatmul.mubr.f32.vlgmr.msra.gmra.mxu1 %v9006_v41  ;;  %8211 = vmatprep.subr.mxu1 %v8600_v8  ;;  %v406_v3 = vadd.f32 %v405_v1, %v329_v62 }
 0x153   :  { %8177 = vmatpush3.msra.mxu0 %v8687_v13  ;;  %8212 = vmatpush3.msra.mxu1 %v8705_v19  ;;  %v7944_v6 = vpop.f32.mrf.mxu0  ;;  %v5794_v59 = vand.u32 4294901760, %v5793_v57 }
 0x154   :  { %8178 = vmatprep.subr.mxu0 %v8600_v8  ;;  %8213 = vmatprep.subr.mxu1 %v8600_v8  ;;  %v479_v10 = vadd.f32 %v478_v2, %v406_v3 }
 0x155   :  { %8179 = vmatpush3.msra.mxu0 %v8690_v14  ;;  %8180 = vmatprep.mubr.msk.f32.mxu0 %vm8601_vm0, %v8600_v8  ;;  %v5795_v1 = vsub.f32 %v5793_v57, %v5794_v59 }
 0x156   :  { %8214 = vmatpush3.msra.mxu1 %v8707_v20  ;;  %8215 = vmatprep.mubr.msk.f32.mxu1 %vm8601_vm0, %v8600_v8  ;;  %483 = vst.msk [vmem:[%s9570_s2] sm:$0xf] %vm482_vm2, %v479_v10 }
 0x157   :  { %8181 = vmatmul.mubr.f32.vlgmr.msra.gmra.mxu0 %v9017_v42  ;;  %8190 = vmatprep.subr.mxu0 %v8600_v8 }
 0x158   :  { %8216 = vmatmul.mubr.f32.vlgmr.msra.gmra.mxu1 %v9056_v63  ;;  %8225 = vmatprep.subr.mxu1 %v8600_v8 }
 0x159   :  { %8191 = vmatpush3.msra.mxu0 %v8694_v15  ;;  %8226 = vmatpush3.msra.mxu1 %v8675_v11 }
 0x15a   :  { %8192 = vmatprep.subr.mxu0 %v8600_v8  ;;  %8227 = vmatprep.subr.mxu1 %v8600_v8 }
 0x15b   :  { %8193 = vmatpush3.msra.mxu0 %v8698_v16  ;;  %8194 = vmatprep.mubr.msk.f32.mxu0 %vm8601_vm0, %v8600_v8 }
 0x15c   :  { %8228 = vmatpush3.msra.mxu1 %v8677_v12  ;;  %8229 = vmatprep.mubr.msk.f32.mxu1 %vm8601_vm0, %v8600_v8 }
 0x15d   :  { %8195 = vmatmul.mubr.f32.vlgmr.msra.gmra.mxu0 %v9006_v41  ;;  %8204 = vmatprep.subr.mxu0 %v8600_v8 }
 0x15e   :  { %8230 = vmatmul.mubr.f32.vlgmr.msra.gmra.mxu1 %v3418_v46  ;;  %8239 = vmatprep.subr.mxu1 %v8600_v8 }
 0x15f   :  { %8205 = vmatpush3.msra.mxu0 %v8675_v11  ;;  %8240 = vmatpush3.msra.mxu1 %v8675_v11 }
 0x160   :  { %8206 = vmatprep.subr.mxu0 %v8600_v8  ;;  %8241 = vmatprep.subr.mxu1 %v8600_v8 }
 0x161   :  { %8207 = vmatpush3.msra.mxu0 %v8677_v12  ;;  %8208 = vmatprep.mubr.msk.f32.mxu0 %vm8601_vm0, %v8600_v8 }
 0x162   :  { %8242 = vmatpush3.msra.mxu1 %v8677_v12  ;;  %8243 = vmatprep.mubr.msk.f32.mxu1 %vm8601_vm0, %v8600_v8 }
 0x163   :  { %7149 = vrot.lane.b32.xlu1 %v7147_v7, %s8604_s3  ;;  %8209 = vmatmul.mubr.f32.vlgmr.msra.gmra.mxu0 %v3420_v24 }
 0x164   :  { %8218 = vmatprep.subr.mxu0 %v8600_v8  ;;  %8244 = vmatmul.mubr.f32.vlgmr.msra.gmra.mxu1 %v9056_v63 }
 0x165   :  { %8219 = vmatpush3.msra.mxu0 %v8687_v13  ;;  %8222 = vmatprep.mubr.msk.f32.mxu0 %vm8601_vm0, %v8600_v8 }
 0x166   :  { %8220 = vmatprep.subr.mxu0 %v8600_v8  ;;  %8253 = vmatprep.subr.mxu1 %v8600_v8 }
 0x167   :  { %8221 = vmatpush3.msra.mxu0 %v8690_v14  ;;  %8254 = vmatpush3.msra.mxu1 %v8705_v19 }
 0x168   :  { %8223 = vmatmul.mubr.f32.vlgmr.msra.gmra.mxu0 %v3417_v4  ;;  %8232 = vmatprep.subr.mxu0 %v8600_v8  ;;  %v5796_v4 = vand.u32 4294901760, %v5795_v1 }
 0x169   :  { %8233 = vmatpush3.msra.mxu0 %v8694_v15  ;;  %8236 = vmatprep.mubr.msk.f32.mxu0 %vm8601_vm0, %v8600_v8 }
 0x16a   :  { %8234 = vmatprep.subr.mxu0 %v8600_v8  ;;  %8255 = vmatprep.subr.mxu1 %v8600_v8 }
 0x16b   :  { %8235 = vmatpush3.msra.mxu0 %v8698_v16  ;;  %8256 = vmatpush3.msra.mxu1 %v8707_v20 }
 0x16c   :  { %8237 = vmatmul.mubr.f32.vlgmr.msra.gmra.mxu0 %v9056_v63  ;;  %8246 = vmatprep.subr.mxu0 %v8600_v8  ;;  %v4296_v27 = vpop.permute.xlu1 %4295 }
 0x16d   :  { %8247 = vmatpush3.msra.mxu0 %v8675_v11  ;;  %8250 = vmatprep.mubr.msk.f32.mxu0 %vm8601_vm0, %v8600_v8  ;;  %v4297_v28 = vsel %vm19_vm1, %v4296_v27, 0 }
 0x16e   :  { %8248 = vmatprep.subr.mxu0 %v8600_v8  ;;  %8257 = vmatprep.mubr.msk.f32.mxu1 %vm8601_vm0, %v8600_v8  ;;  %v9147_v29 = vand.u32 4294901760, %v4297_v28 }
 0x16f   :  { %8249 = vmatpush3.msra.mxu0 %v8677_v12  ;;  %8258 = vmatmul.mubr.f32.vlgmr.msra.gmra.mxu1 %v9091_v21 }
 0x170   :  { %8251 = vmatmul.mubr.f32.vlgmr.msra.gmra.mxu0 %v3894_v26  ;;  %8260 = vmatprep.subr.mxu0 %v8600_v8  ;;  %v4367_v30 = vsub.f32 %v4297_v28, %v9147_v29 }
 0x171   :  { %8267 = vmatprep.subr.mxu1 %v8600_v8  ;;  %8261 = vmatpush3.msra.mxu0 %v8687_v13 }
 0x172   :  { %8268 = vmatpush3.msra.mxu1 %v8675_v11  ;;  %8262 = vmatprep.subr.mxu0 %v8600_v8  ;;  %v4368_v31 = vand.u32 4294901760, %v4367_v30 }
 0x173   :  { %8269 = vmatprep.subr.mxu1 %v8600_v8  ;;  %8263 = vmatpush3.msra.mxu0 %v8690_v14 }
 0x174   :  { %8264 = vmatprep.mubr.msk.f32.mxu0 %vm8601_vm0, %v8600_v8  ;;  %8270 = vmatpush3.msra.mxu1 %v8677_v12  ;;  %v4369_v32 = vsub.f32 %v4367_v30, %v4368_v31 }
 0x175   :  { %8271 = vmatprep.mubr.msk.f32.mxu1 %vm8601_vm0, %v8600_v8  ;;  %8265 = vmatmul.mubr.f32.vlgmr.msra.gmra.mxu0 %v3891_v23 }
 0x176   :  { %8272 = vmatmul.mubr.f32.vlgmr.msra.gmra.mxu1 %v3892_v47  ;;  %8274 = vmatprep.subr.mxu0 %v8600_v8  ;;  %v4370_v34 = vand.u32 4294901760, %v4369_v32 }
 0x177   :  { %8281 = vmatprep.subr.mxu1 %v8600_v8  ;;  %8275 = vmatpush3.msra.mxu0 %v8694_v15 }
 0x178   :  { %8282 = vmatpush3.msra.mxu1 %v8675_v11  ;;  %8276 = vmatprep.subr.mxu0 %v8600_v8 }
 0x179   :  { %8283 = vmatprep.subr.mxu1 %v8600_v8  ;;  %8277 = vmatpush3.msra.mxu0 %v8698_v16  ;;  %v4772_v33 = vpop.permute.xlu1 %4771 }
 0x17a   :  { %8278 = vmatprep.mubr.msk.f32.mxu0 %vm8601_vm0, %v8600_v8  ;;  %8284 = vmatpush3.msra.mxu1 %v8677_v12  ;;  %v4773_v35 = vsel %vm19_vm1, %v4772_v33, 0 }
 0x17b   :  { %8285 = vmatprep.mubr.msk.f32.mxu1 %vm8601_vm0, %v8600_v8  ;;  %8279 = vmatmul.mubr.f32.vlgmr.msra.gmra.mxu0 %v9091_v21  ;;  %v9193_v36 = vand.u32 4294901760, %v4773_v35 }
 0x17c   :  { %8286 = vmatmul.mubr.f32.vlgmr.msra.gmra.mxu1 %v9091_v21  ;;  %8295 = vmatprep.subr.mxu1 %v8600_v8 }
 0x17d   :  { %8296 = vmatpush3.msra.mxu1 %v8705_v19  ;;  %8299 = vmatprep.mubr.msk.f32.mxu1 %vm8601_vm0, %v8600_v8  ;;  %v4843_v37 = vsub.f32 %v4773_v35, %v9193_v36 }
 0x17e   :  { %8297 = vmatprep.subr.mxu1 %v8600_v8  ;;  %8288 = vmatprep.subr.mxu0 %v8600_v8 }
 0x17f   :  { %8298 = vmatpush3.msra.mxu1 %v8707_v20  ;;  %8289 = vmatpush3.msra.mxu0 %v8675_v11  ;;  %v4844_v38 = vand.u32 4294901760, %v4843_v37 }
 0x180   :  { %8300 = vmatmul.mubr.f32.vlgmr.msra.gmra.mxu1 %v9147_v29  ;;  %8309 = vmatprep.subr.mxu1 %v8600_v8 }
 0x181   :  { %8310 = vmatpush3.msra.mxu1 %v8675_v11  ;;  %8313 = vmatprep.mubr.msk.f32.mxu1 %vm8601_vm0, %v8600_v8  ;;  %v4845_v39 = vsub.f32 %v4843_v37, %v4844_v38 }
 0x182   :  { %8311 = vmatprep.subr.mxu1 %v8600_v8  ;;  %8290 = vmatprep.subr.mxu0 %v8600_v8 }
 0x183   :  { %8312 = vmatpush3.msra.mxu1 %v8677_v12  ;;  %8291 = vmatpush3.msra.mxu0 %v8677_v12  ;;  %v4846_v42 = vand.u32 4294901760, %v4845_v39 }
 0x184   :  { %8314 = vmatmul.mubr.f32.vlgmr.msra.gmra.mxu1 %v4368_v31  ;;  %8323 = vmatprep.subr.mxu1 %v8600_v8 }
 0x185   :  { %8324 = vmatpush3.msra.mxu1 %v8675_v11  ;;  %8292 = vmatprep.mubr.msk.f32.mxu0 %vm8601_vm0, %v8600_v8 }
 0x186   :  { %8325 = vmatprep.subr.mxu1 %v8600_v8  ;;  %8302 = vmatprep.subr.mxu0 %v8600_v8 }
 0x187   :  { %8326 = vmatpush3.msra.mxu1 %v8677_v12  ;;  %8327 = vmatprep.mubr.msk.f32.mxu1 %vm8601_vm0, %v8600_v8 }
 0x188   :  { %8293 = vmatmul.mubr.f32.vlgmr.msra.gmra.mxu0 %v4370_v34  ;;  %8328 = vmatmul.mubr.f32.vlgmr.msra.gmra.mxu1 %v9147_v29 }
 0x189   :  { %8303 = vmatpush3.msra.mxu0 %v8687_v13  ;;  %8337 = vmatprep.subr.mxu1 %v8600_v8 }
 0x18a   :  { %8304 = vmatprep.subr.mxu0 %v8600_v8  ;;  %8338 = vmatpush3.msra.mxu1 %v8705_v19 }
 0x18b   :  { %8305 = vmatpush3.msra.mxu0 %v8690_v14  ;;  %8339 = vmatprep.subr.mxu1 %v8600_v8  ;;  %v5248_v40 = vpop.permute.xlu1 %5247 }
 0x18c   :  { %8306 = vmatprep.mubr.msk.f32.mxu0 %vm8601_vm0, %v8600_v8  ;;  %8316 = vmatprep.subr.mxu0 %v8600_v8  ;;  %v5249_v41 = vsel %vm19_vm1, %v5248_v40, 0 }
 0x18d   :  { %8340 = vmatpush3.msra.mxu1 %v8707_v20  ;;  %8341 = vmatprep.mubr.msk.f32.mxu1 %vm8601_vm0, %v8600_v8  ;;  %v9236_v43 = vand.u32 4294901760, %v5249_v41 }
 0x18e   :  { %8307 = vmatmul.mubr.f32.vlgmr.msra.gmra.mxu0 %v4367_v30  ;;  %8342 = vmatmul.mubr.f32.vlgmr.msra.gmra.mxu1 %v9193_v36 }
 0x18f   :  { %8317 = vmatpush3.msra.mxu0 %v8694_v15  ;;  %8351 = vmatprep.subr.mxu1 %v8600_v8  ;;  %v5319_v44 = vsub.f32 %v5249_v41, %v9236_v43 }
 0x190   :  { %8318 = vmatprep.subr.mxu0 %v8600_v8  ;;  %8352 = vmatpush3.msra.mxu1 %v8675_v11 }
 0x191   :  { %8319 = vmatpush3.msra.mxu0 %v8698_v16  ;;  %8353 = vmatprep.subr.mxu1 %v8600_v8  ;;  %v5320_v49 = vand.u32 4294901760, %v5319_v44 }
 0x192   :  { %8320 = vmatprep.mubr.msk.f32.mxu0 %vm8601_vm0, %v8600_v8  ;;  %8330 = vmatprep.subr.mxu0 %v8600_v8 }
 0x193   :  { %8354 = vmatpush3.msra.mxu1 %v8677_v12  ;;  %8355 = vmatprep.mubr.msk.f32.mxu1 %vm8601_vm0, %v8600_v8  ;;  %v5321_v52 = vsub.f32 %v5319_v44, %v5320_v49 }
 0x194   :  { %8321 = vmatmul.mubr.f32.vlgmr.msra.gmra.mxu0 %v9147_v29  ;;  %8356 = vmatmul.mubr.f32.vlgmr.msra.gmra.mxu1 %v4844_v38 }
 0x195   :  { %8331 = vmatpush3.msra.mxu0 %v8675_v11  ;;  %8365 = vmatprep.subr.mxu1 %v8600_v8  ;;  %v5322_v48 = vand.u32 4294901760, %v5321_v52 }
 0x196   :  { %8332 = vmatprep.subr.mxu0 %v8600_v8  ;;  %8366 = vmatpush3.msra.mxu1 %v8675_v11 }
 0x197   :  { %8333 = vmatpush3.msra.mxu0 %v8677_v12  ;;  %8367 = vmatprep.subr.mxu1 %v8600_v8 }
 0x198   :  { %8334 = vmatprep.mubr.msk.f32.mxu0 %vm8601_vm0, %v8600_v8  ;;  %8344 = vmatprep.subr.mxu0 %v8600_v8 }
 0x199   :  { %8368 = vmatpush3.msra.mxu1 %v8677_v12  ;;  %8369 = vmatprep.mubr.msk.f32.mxu1 %vm8601_vm0, %v8600_v8 }
 0x19a   :  { %8335 = vmatmul.mubr.f32.vlgmr.msra.gmra.mxu0 %v4846_v42  ;;  %8370 = vmatmul.mubr.f32.vlgmr.msra.gmra.mxu1 %v9193_v36 }
 0x19b   :  { %8345 = vmatpush3.msra.mxu0 %v8687_v13  ;;  %8379 = vmatprep.subr.mxu1 %v8600_v8 }
 0x19c   :  { %8346 = vmatprep.subr.mxu0 %v8600_v8  ;;  %8380 = vmatpush3.msra.mxu1 %v8705_v19 }
 0x19d   :  { %8347 = vmatpush3.msra.mxu0 %v8690_v14  ;;  %8381 = vmatprep.subr.mxu1 %v8600_v8 }
 0x19e   :  { %8348 = vmatprep.mubr.msk.f32.mxu0 %vm8601_vm0, %v8600_v8  ;;  %8358 = vmatprep.subr.mxu0 %v8600_v8 }
 0x19f   :  { %8382 = vmatpush3.msra.mxu1 %v8707_v20  ;;  %8383 = vmatprep.mubr.msk.f32.mxu1 %vm8601_vm0, %v8600_v8 }
 0x1a0   :  { %8349 = vmatmul.mubr.f32.vlgmr.msra.gmra.mxu0 %v4843_v37  ;;  %8384 = vmatmul.mubr.f32.vlgmr.msra.gmra.mxu1 %v9236_v43 }
 0x1a1   :  { %8359 = vmatpush3.msra.mxu0 %v8694_v15  ;;  %8393 = vmatprep.subr.mxu1 %v8600_v8 }
 0x1a2   :  { %8360 = vmatprep.subr.mxu0 %v8600_v8  ;;  %8394 = vmatpush3.msra.mxu1 %v8675_v11 }
 0x1a3   :  { %8361 = vmatpush3.msra.mxu0 %v8698_v16  ;;  %8395 = vmatprep.subr.mxu1 %v8600_v8 }
 0x1a4   :  { %8362 = vmatprep.mubr.msk.f32.mxu0 %vm8601_vm0, %v8600_v8  ;;  %8372 = vmatprep.subr.mxu0 %v8600_v8 }
 0x1a5   :  { %8396 = vmatpush3.msra.mxu1 %v8677_v12  ;;  %8397 = vmatprep.mubr.msk.f32.mxu1 %vm8601_vm0, %v8600_v8 }
 0x1a6   :  { %8363 = vmatmul.mubr.f32.vlgmr.msra.gmra.mxu0 %v9193_v36  ;;  %8398 = vmatmul.mubr.f32.vlgmr.msra.gmra.mxu1 %v5320_v49 }
 0x1a7   :  { %8373 = vmatpush3.msra.mxu0 %v8675_v11  ;;  %8407 = vmatprep.subr.mxu1 %v8600_v8 }
 0x1a8   :  { %8374 = vmatprep.subr.mxu0 %v8600_v8  ;;  %8408 = vmatpush3.msra.mxu1 %v8675_v11 }
 0x1a9   :  { %8375 = vmatpush3.msra.mxu0 %v8677_v12  ;;  %8409 = vmatprep.subr.mxu1 %v8600_v8 }
 0x1aa   :  { %8376 = vmatprep.mubr.msk.f32.mxu0 %vm8601_vm0, %v8600_v8  ;;  %8386 = vmatprep.subr.mxu0 %v8600_v8 }
 0x1ab   :  { %8410 = vmatpush3.msra.mxu1 %v8677_v12  ;;  %8411 = vmatprep.mubr.msk.f32.mxu1 %vm8601_vm0, %v8600_v8 }
 0x1ac   :  { %8377 = vmatmul.mubr.f32.vlgmr.msra.gmra.mxu0 %v5322_v48  ;;  %8412 = vmatmul.mubr.f32.vlgmr.msra.gmra.mxu1 %v9236_v43 }
 0x1ad   :  { %8387 = vmatpush3.msra.mxu0 %v8687_v13  ;;  %8421 = vmatprep.subr.mxu1 %v8600_v8  ;;  %v9285_v55 = vpop.f32.mrf.mxu1 }
 0x1ae   :  { %8388 = vmatprep.subr.mxu0 %v8600_v8  ;;  %8422 = vmatpush3.msra.mxu1 %v8705_v19 }
 0x1af   :  { %8389 = vmatpush3.msra.mxu0 %v8690_v14  ;;  %8423 = vmatprep.subr.mxu1 %v8600_v8  ;;  %v7965_v56 = vpop.f32.mrf.mxu1 }
 0x1b0   :  { %8390 = vmatprep.mubr.msk.f32.mxu0 %vm8601_vm0, %v8600_v8  ;;  %8400 = vmatprep.subr.mxu0 %v8600_v8  ;;  %v6198_v0 = vpop.permute.xlu1 %6197 }
 0x1b1   :  { %8424 = vmatpush3.msra.mxu1 %v8707_v20  ;;  %8425 = vmatprep.mubr.msk.f32.mxu1 %vm8601_vm0, %v8600_v8  ;;  %v9298_v45 = vpop.f32.mrf.mxu1  ;;  %v6199_v2 = vsel %vm19_vm1, %v6198_v0, 0 }
 0x1b2   :  { %8391 = vmatmul.mubr.f32.vlgmr.msra.gmra.mxu0 %v5319_v44  ;;  %8426 = vmatmul.mubr.f32.vlgmr.msra.gmra.mxu1 %v9280_v54  ;;  %v9335_v9 = vand.u32 4294901760, %v6199_v2 }
 0x1b3   :  { %8401 = vmatpush3.msra.mxu0 %v8694_v15  ;;  %8435 = vmatprep.subr.mxu1 %v8600_v8  ;;  %v7979_v58 = vpop.f32.mrf.mxu1 }
 0x1b4   :  { %8402 = vmatprep.subr.mxu0 %v8600_v8  ;;  %8436 = vmatpush3.msra.mxu1 %v8675_v11  ;;  %v6269_v17 = vsub.f32 %v6199_v2, %v9335_v9 }
 0x1b5   :  { %8403 = vmatpush3.msra.mxu0 %v8698_v16  ;;  %8437 = vmatprep.subr.mxu1 %v8600_v8  ;;  %v9307_v60 = vpop.f32.mrf.mxu0  ;;  %v9309_v61 = vpop.f32.mrf.mxu1 }
 0x1b6   :  { %8404 = vmatprep.mubr.msk.f32.mxu0 %vm8601_vm0, %v8600_v8  ;;  %8414 = vmatprep.subr.mxu0 %v8600_v8  ;;  %v6270_v7 = vand.u32 4294901760, %v6269_v17  ;;  %v650_v58 = vadd.f32 %v9285_v55, %v9307_v60 }
 0x1b7   :  { %8438 = vmatpush3.msra.mxu1 %v8677_v12  ;;  %8439 = vmatprep.mubr.msk.f32.mxu1 %vm8601_vm0, %v8600_v8  ;;  %v7958_v62 = vpop.f32.mrf.mxu0  ;;  %v7993_v63 = vpop.f32.mrf.mxu1 }
 0x1b8   :  { %8405 = vmatmul.mubr.f32.vlgmr.msra.gmra.mxu0 %v9236_v43  ;;  %8440 = vmatmul.mubr.f32.vlgmr.msra.gmra.mxu1 %v5794_v59  ;;  %v6271_v25 = vsub.f32 %v6269_v17, %v6270_v7 }
 0x1b9   :  { %8415 = vmatpush3.msra.mxu0 %v8675_v11  ;;  %8449 = vmatprep.subr.mxu1 %v8600_v8 }
 0x1ba   :  { %8416 = vmatprep.subr.mxu0 %v8600_v8  ;;  %8450 = vmatpush3.msra.mxu1 %v8675_v11  ;;  %v6272_v30 = vand.u32 4294901760, %v6271_v25 }
 0x1bb   :  { %8417 = vmatpush3.msra.mxu0 %v8677_v12  ;;  %8451 = vmatprep.subr.mxu1 %v8600_v8  ;;  %v9325_v3 = vpop.f32.mrf.mxu0 }
 0x1bc   :  { %8418 = vmatprep.mubr.msk.f32.mxu0 %vm8601_vm0, %v8600_v8  ;;  %8428 = vmatprep.subr.mxu0 %v8600_v8  ;;  %v9330_v5 = vpop.f32.mrf.mxu1 }
 0x1bd   :  { %8452 = vmatpush3.msra.mxu1 %v8677_v12  ;;  %8453 = vmatprep.mubr.msk.f32.mxu1 %vm8601_vm0, %v8600_v8  ;;  %v7972_v6 = vpop.f32.mrf.mxu0 }
 0x1be   :  { %8419 = vmatmul.mubr.f32.vlgmr.msra.gmra.mxu0 %v5796_v4  ;;  %8454 = vmatmul.mubr.f32.vlgmr.msra.gmra.mxu1 %v9280_v54  ;;  %v8007_v10 = vpop.f32.mrf.mxu1 }
 0x1bf   :  { %8429 = vmatpush3.msra.mxu0 %v8687_v13  ;;  %8463 = vmatprep.subr.mxu1 %v8600_v8 }
 0x1c0   :  { %8430 = vmatprep.subr.mxu0 %v8600_v8  ;;  %8464 = vmatpush3.msra.mxu1 %v8705_v19  ;;  %v6674_v26 = vpop.permute.xlu0 %6673 }
 0x1c1   :  { %8431 = vmatpush3.msra.mxu0 %v8690_v14  ;;  %8465 = vmatprep.subr.mxu1 %v8600_v8  ;;  %v9344_v46 = vpop.f32.mrf.mxu0  ;;  %v6675_v28 = vsel %vm19_vm1, %v6674_v26, 0 }
 0x1c2   :  { %8432 = vmatprep.mubr.msk.f32.mxu0 %vm8601_vm0, %v8600_v8  ;;  %8442 = vmatprep.subr.mxu0 %v8600_v8  ;;  %v9350_v18 = vpop.f32.mrf.mxu1  ;;  %v9390_v33 = vand.u32 4294901760, %v6675_v28 }
 0x1c3   :  { %8466 = vmatpush3.msra.mxu1 %v8707_v20  ;;  %8467 = vmatprep.mubr.msk.f32.mxu1 %vm8601_vm0, %v8600_v8  ;;  %v7986_v21 = vpop.f32.mrf.mxu0 }
 0x1c4   :  { %8433 = vmatmul.mubr.f32.vlgmr.msra.gmra.mxu0 %v5793_v57  ;;  %8468 = vmatmul.mubr.f32.vlgmr.msra.gmra.mxu1 %v9335_v9  ;;  %v8021_v22 = vpop.f32.mrf.mxu1  ;;  %v9402_v36 = vsub.f32 %v6675_v28, %v9390_v33 }
 0x1c5   :  { %8443 = vmatpush3.msra.mxu0 %v8694_v15  ;;  %8477 = vmatprep.subr.mxu1 %v8600_v8 }
 0x1c6   :  { %8444 = vmatprep.subr.mxu0 %v8600_v8  ;;  %8478 = vmatpush3.msra.mxu1 %v8675_v11  ;;  %v6746_v40 = vand.u32 4294901760, %v9402_v36 }
 0x1c7   :  { %8445 = vmatpush3.msra.mxu0 %v8698_v16  ;;  %8479 = vmatprep.subr.mxu1 %v8600_v8  ;;  %v9362_v23 = vpop.f32.mrf.mxu0 }
 0x1c8   :  { %8446 = vmatprep.mubr.msk.f32.mxu0 %vm8601_vm0, %v8600_v8  ;;  %8456 = vmatprep.subr.mxu0 %v8600_v8  ;;  %v9367_v24 = vpop.f32.mrf.mxu1  ;;  %v6747_v43 = vsub.f32 %v9402_v36, %v6746_v40  ;;  %v1126_v59 = vadd.f32 %v9330_v5, %v9362_v23 }
 0x1c9   :  { %8480 = vmatpush3.msra.mxu1 %v8677_v12  ;;  %8481 = vmatprep.mubr.msk.f32.mxu1 %vm8601_vm0, %v8600_v8  ;;  %v8000_v47 = vpop.f32.mrf.mxu0 }
 0x1ca   :  { %8447 = vmatmul.mubr.f32.vlgmr.msra.gmra.mxu0 %v9280_v54  ;;  %8482 = vmatmul.mubr.f32.vlgmr.msra.gmra.mxu1 %v6270_v7  ;;  %v8035_v27 = vpop.f32.mrf.mxu1  ;;  %v6748_v52 = vand.u32 4294901760, %v6747_v43 }
 0x1cb   :  { %8457 = vmatpush3.msra.mxu0 %v8675_v11  ;;  %8491 = vmatprep.subr.mxu1 %v8600_v8 }
 0x1cc   :  { %8458 = vmatprep.subr.mxu0 %v8600_v8  ;;  %8492 = vmatpush3.msra.mxu1 %v8675_v11 }
 0x1cd   :  { %8459 = vmatpush3.msra.mxu0 %v8677_v12  ;;  %8493 = vmatprep.subr.mxu1 %v8600_v8  ;;  %v9380_v29 = vpop.f32.mrf.mxu0 }
 0x1ce   :  { %8460 = vmatprep.mubr.msk.f32.mxu0 %vm8601_vm0, %v8600_v8  ;;  %8470 = vmatprep.subr.mxu0 %v8600_v8  ;;  %v9385_v31 = vpop.f32.mrf.mxu1  ;;  %v1202_v55 = vadd.f32 %v9380_v29, %v1126_v59 }
 0x1cf   :  { %8494 = vmatpush3.msra.mxu1 %v8677_v12  ;;  %8495 = vmatprep.mubr.msk.f32.mxu1 %vm8601_vm0, %v8600_v8  ;;  %v8014_v32 = vpop.f32.mrf.mxu0 }
 0x1d0   :  { %8461 = vmatmul.mubr.f32.vlgmr.msra.gmra.mxu0 %v6272_v30  ;;  %8496 = vmatmul.mubr.f32.vlgmr.msra.gmra.mxu1 %v9335_v9  ;;  %v8049_v34 = vpop.f32.mrf.mxu1  ;;  %v1277_v5 = vadd.f32 %v9350_v18, %v1202_v55 }
 0x1d1   :  { %8471 = vmatpush3.msra.mxu0 %v8687_v13  ;;  %8505 = vmatprep.subr.mxu1 %v8600_v8 }
 0x1d2   :  { %8472 = vmatprep.subr.mxu0 %v8600_v8  ;;  %8506 = vmatpush3.msra.mxu1 %v8705_v19 }
 0x1d3   :  { %8473 = vmatpush3.msra.mxu0 %v8690_v14  ;;  %8507 = vmatprep.subr.mxu1 %v8600_v8  ;;  %v9399_v35 = vpop.f32.mrf.mxu0 }
 0x1d4   :  { %8474 = vmatprep.mubr.msk.f32.mxu0 %vm8601_vm0, %v8600_v8  ;;  %8484 = vmatprep.subr.mxu0 %v8600_v8  ;;  %v9407_v37 = vpop.f32.mrf.mxu1  ;;  %v1354_v21 = vadd.f32 %v9399_v35, %v1277_v5 }
 0x1d5   :  { %8508 = vmatpush3.msra.mxu1 %v8707_v20  ;;  %8509 = vmatprep.mubr.msk.f32.mxu1 %vm8601_vm0, %v8600_v8  ;;  %v8028_v38 = vpop.f32.mrf.mxu0  ;;  %v7150_v44 = vpop.permute.xlu1 %7149 }
 0x1d6   :  { %8475 = vmatmul.mubr.f32.vlgmr.msra.gmra.mxu0 %v6269_v17  ;;  %8510 = vmatmul.mubr.f32.vlgmr.msra.gmra.mxu1 %v9390_v33  ;;  %v8063_v39 = vpop.f32.mrf.mxu1  ;;  %v7151_v51 = vsel %vm19_vm1, %v7150_v44, 0  ;;  %vm7616_vm1 = vcmask 1044416  }
 0x1d7   :  { %8485 = vmatpush3.msra.mxu0 %v8694_v15  ;;  %8519 = vmatprep.subr.mxu1 %v8600_v8  ;;  %v9443_v54 = vand.u32 4294901760, %v7151_v51 }
 0x1d8   :  { %8486 = vmatprep.subr.mxu0 %v8600_v8  ;;  %8520 = vmatpush3.msra.mxu1 %v8675_v11 }
 0x1d9   :  { %8487 = vmatpush3.msra.mxu0 %v8698_v16  ;;  %8521 = vmatprep.subr.mxu1 %v8600_v8  ;;  %v9457_v62 = vsub.f32 %v7151_v51, %v9443_v54 }
 0x1da   :  { %8488 = vmatprep.mubr.msk.f32.mxu0 %vm8601_vm0, %v8600_v8  ;;  %8498 = vmatprep.subr.mxu0 %v8600_v8  ;;  %v1520_v41 = vpop.f32.mrf.mxu0 }
 0x1db   :  { %8522 = vmatpush3.msra.mxu1 %v8677_v12  ;;  %8523 = vmatprep.mubr.msk.f32.mxu1 %vm8601_vm0, %v8600_v8  ;;  %v9426_v42 = vpop.f32.mrf.mxu1  ;;  %v1602_v0 = vadd.f32 %v9385_v31, %v1520_v41 }
 0x1dc   :  { %8489 = vmatmul.mubr.f32.vlgmr.msra.gmra.mxu0 %v9335_v9  ;;  %8524 = vmatmul.mubr.f32.vlgmr.msra.gmra.mxu1 %v6746_v40  ;;  %v8042_v49 = vpop.f32.mrf.mxu0 }
 0x1dd   :  { %8499 = vmatpush3.msra.mxu0 %v8675_v11  ;;  %8533 = vmatprep.subr.mxu1 %v8600_v8  ;;  %v8077_v50 = vpop.f32.mrf.mxu1 }
 0x1de   :  { %8500 = vmatprep.subr.mxu0 %v8600_v8  ;;  %8534 = vmatpush3.msra.mxu1 %v8675_v11 }
 0x1df   :  { %8501 = vmatpush3.msra.mxu0 %v8677_v12  ;;  %8535 = vmatprep.subr.mxu1 %v8600_v8 }
 0x1e0   :  { %8502 = vmatprep.mubr.msk.f32.mxu0 %vm8601_vm0, %v8600_v8  ;;  %8512 = vmatprep.subr.mxu0 %v8600_v8  ;;  %v1677_v53 = vpop.f32.mrf.mxu0 }
 0x1e1   :  { %8536 = vmatpush3.msra.mxu1 %v8677_v12  ;;  %8537 = vmatprep.mubr.msk.f32.mxu1 %vm8601_vm0, %v8600_v8  ;;  %v2075_v48 = vpop.f32.mrf.mxu1  ;;  %v1678_v4 = vadd.f32 %v1677_v53, %v1602_v0 }
 0x1e2   :  { %8503 = vmatmul.mubr.f32.vlgmr.msra.gmra.mxu0 %v6748_v52  ;;  %8538 = vmatmul.mubr.f32.vlgmr.msra.gmra.mxu1 %v9390_v33  ;;  %v8056_v56 = vpop.f32.mrf.mxu0 }
 0x1e3   :  { %8513 = vmatpush3.msra.mxu0 %v8687_v13  ;;  %8547 = vmatprep.subr.mxu1 %v8600_v8  ;;  %v8091_v57 = vpop.f32.mrf.mxu1  ;;  %v1753_v17 = vadd.f32 %v9407_v37, %v1678_v4 }
 0x1e4   :  { %8514 = vmatprep.subr.mxu0 %v8600_v8  ;;  %8548 = vmatpush3.msra.mxu1 %v8705_v19  ;;  %v726_v19 = vadd.f32 %v9325_v3, %v650_v58 }
 0x1e5   :  { %8515 = vmatpush3.msra.mxu0 %v8690_v14  ;;  %8549 = vmatprep.subr.mxu1 %v8600_v8 }
 0x1e6   :  { %8516 = vmatprep.mubr.msk.f32.mxu0 %vm8601_vm0, %v8600_v8  ;;  %8526 = vmatprep.subr.mxu0 %v8600_v8  ;;  %v1829_v63 = vpop.f32.mrf.mxu0  ;;  %v801_v3 = vadd.f32 %v9298_v45, %v726_v19 }
 0x1e7   :  { %8550 = vmatpush3.msra.mxu1 %v8707_v20  ;;  %8551 = vmatprep.mubr.msk.f32.mxu1 %vm8601_vm0, %v8600_v8  ;;  %v2226_v60 = vpop.f32.mrf.mxu1  ;;  %v7222_v20 = vand.u32 4294901760, %v9457_v62  ;;  %v1830_v47 = vadd.f32 %v1829_v63, %v1753_v17 }
 0x1e8   :  { %8517 = vmatmul.mubr.f32.vlgmr.msra.gmra.mxu0 %v9402_v36  ;;  %8552 = vmatmul.mubr.f32.vlgmr.msra.gmra.mxu1 %v9443_v54  ;;  %v8070_v1 = vpop.f32.mrf.mxu0  ;;  %v878_v10 = vadd.f32 %v9344_v46, %v801_v3 }
 0x1e9   :  { %8527 = vmatpush3.msra.mxu0 %v8694_v15  ;;  %8561 = vmatprep.subr.mxu1 %v8600_v8  ;;  %v8105_v2 = vpop.f32.mrf.mxu1  ;;  %v7223_v45 = vsub.f32 %v9457_v62, %v7222_v20 }
 0x1ea   :  { %8528 = vmatprep.subr.mxu0 %v8600_v8  ;;  %8562 = vmatpush3.msra.mxu1 %v8675_v11  ;;  %v951_v23 = vadd.f32 %v9309_v61, %v878_v10 }
 0x1eb   :  { %8529 = vmatpush3.msra.mxu0 %v8698_v16  ;;  %8563 = vmatprep.subr.mxu1 %v8600_v8  ;;  %v7224_v46 = vand.u32 4294901760, %v7223_v45 }
 0x1ec   :  { %8530 = vmatprep.mubr.msk.f32.mxu0 %vm8601_vm0, %v8600_v8  ;;  %8540 = vmatprep.subr.mxu0 %v8600_v8  ;;  %v1994_v6 = vpop.f32.mrf.mxu0 }
 0x1ed   :  { %8564 = vmatpush3.msra.mxu1 %v8677_v12  ;;  %8565 = vmatprep.mubr.msk.f32.mxu1 %vm8601_vm0, %v8600_v8  ;;  %v2376_v9 = vpop.f32.mrf.mxu1  ;;  %v2076_v22 = vadd.f32 %v2075_v48, %v1994_v6 }
 0x1ee   :  { %8531 = vmatmul.mubr.f32.vlgmr.msra.gmra.mxu0 %v9390_v33  ;;  %8566 = vmatmul.mubr.f32.vlgmr.msra.gmra.mxu1 %v7222_v20  ;;  %v8084_v18 = vpop.f32.mrf.mxu0 }
 0x1ef   :  { %8541 = vmatpush3.msra.mxu0 %v8675_v11  ;;  %8575 = vmatprep.subr.mxu1 %v8600_v8  ;;  %v8119_v7 = vpop.f32.mrf.mxu1 }
 0x1f0   :  { %8542 = vmatprep.subr.mxu0 %v8600_v8  ;;  %8576 = vmatpush3.msra.mxu1 %v8675_v11  ;;  %v1427_v11 = vadd.f32 %v9367_v24, %v1354_v21 }
 0x1f1   :  { %8543 = vmatpush3.msra.mxu0 %v8677_v12  ;;  %8577 = vmatprep.subr.mxu1 %v8600_v8 }
 0x1f2   :  { %8544 = vmatprep.mubr.msk.f32.mxu0 %vm8601_vm0, %v8600_v8  ;;  %8554 = vmatprep.subr.mxu0 %v8600_v8  ;;  %v2151_v25 = vpop.f32.mrf.mxu0 }
 0x1f3   :  { %8578 = vmatpush3.msra.mxu1 %v8677_v12  ;;  %8579 = vmatprep.mubr.msk.f32.mxu1 %vm8601_vm0, %v8600_v8  ;;  %v2152_v26 = vadd.f32 %v2151_v25, %v2076_v22  ;;  %v2551_v27 = vpop.f32.mrf.mxu1  ;;  %v1903_v12 = vadd.f32 %v9426_v42, %v1830_v47 }
 0x1f4   :  { %8545 = vmatmul.mubr.f32.vlgmr.msra.gmra.mxu0 %v7224_v46  ;;  %8580 = vmatmul.mubr.f32.vlgmr.msra.gmra.mxu1 %v9443_v54  ;;  %v8098_v61 = vpop.f32.mrf.mxu0 }
 0x1f5   :  { %8555 = vmatpush3.msra.mxu0 %v8687_v13  ;;  %8558 = vmatprep.mubr.msk.f32.mxu0 %vm8601_vm0, %v8600_v8  ;;  %v8133_v28 = vpop.f32.mrf.mxu1  ;;  %v2227_v29 = vadd.f32 %v2226_v60, %v2152_v26 }
 0x1f6   :  { %8556 = vmatprep.subr.mxu0 %v8600_v8  ;;  %955 = vrot.lane.b32.xlu0 %v951_v23, %s8605_s22 }
 0x1f7   :  { %8557 = vmatpush3.msra.mxu0 %v8690_v14  ;;  %1431 = vrot.lane.b32.xlu1 %v1427_v11, %s8606_s23 }
 0x1f8   :  { %8568 = vmatprep.subr.mxu0 %v8600_v8  ;;  %8559 = vmatmul.mubr.f32.vlgmr.msra.gmra.mxu0 %v9457_v62  ;;  %v2303_v13 = vpop.f32.mrf.mxu0 }
 0x1f9   :  { %8569 = vmatpush3.msra.mxu0 %v8694_v15  ;;  %8572 = vmatprep.mubr.msk.f32.mxu0 %vm8601_vm0, %v8600_v8  ;;  %v2304_v24 = vadd.f32 %v2303_v13, %v2227_v29  ;;  %v2702_v30 = vpop.f32.mrf.mxu1  ;;  %vm7140_vm0 = vcmask 978816  }
 0x1fa   :  { %8570 = vmatprep.subr.mxu0 %v8600_v8  ;;  %1907 = vrot.lane.b32.xlu0 %v1903_v12, %s8607_s24  ;;  %v8112_v31 = vpop.f32.mrf.mxu0 }
 0x1fb   :  { %8571 = vmatpush3.msra.mxu0 %v8698_v16  ;;  %v2377_v14 = vadd.f32 %v2376_v9, %v2304_v24  ;;  %v8147_v32 = vpop.f32.mrf.mxu1 }
 0x1fc   :  { %8573 = vmatmul.mubr.f32.vlgmr.msra.gmra.mxu0 %v9443_v54 }
 0x1fd   :  { %2381 = vrot.lane.b32.xlu1 %v2377_v14, %s8604_s3 }
 0x1fe   :  { %v2470_v33 = vpop.f32.mrf.mxu0 }
 0x1ff   :  { %v2852_v15 = vpop.f32.mrf.mxu1  ;;  %v2552_v36 = vadd.f32 %v2551_v27, %v2470_v33 }
 0x200   :  { %v8126_v34 = vpop.f32.mrf.mxu0 }
 0x201   :  { %v8161_v35 = vpop.f32.mrf.mxu1 }
 0x204   :  { %v2627_v37 = vpop.f32.mrf.mxu0 }
 0x205   :  { %v2628_v38 = vadd.f32 %v2627_v37, %v2552_v36  ;;  %v3027_v39 = vpop.f32.mrf.mxu1 }
 0x206   :  { %v8140_v8 = vpop.f32.mrf.mxu0 }
 0x207   :  { %v8175_v40 = vpop.f32.mrf.mxu1  ;;  %v2703_v41 = vadd.f32 %v2702_v30, %v2628_v38 }
 0x20a   :  { %v2779_v42 = vpop.f32.mrf.mxu0 }
 0x20b   :  { %v2780_v43 = vadd.f32 %v2779_v42, %v2703_v41  ;;  %v3178_v16 = vpop.f32.mrf.mxu1 }
 0x20c   :  { %v8154_v44 = vpop.f32.mrf.mxu0 }
 0x20d   :  { %v2853_v49 = vadd.f32 %v2852_v15, %v2780_v43  ;;  %v8189_v50 = vpop.f32.mrf.mxu1 }
 0x20f   :  { %2857 = vrot.lane.b32.xlu0 %v2853_v49, %s8608_s25 }
 0x211   :  { %v2946_v51 = vpop.f32.mrf.mxu0 }
 0x212   :  { %v3328_v52 = vpop.f32.mrf.mxu1  ;;  %v3028_v54 = vadd.f32 %v3027_v39, %v2946_v51 }
 0x213   :  { %v8168_v53 = vpop.f32.mrf.mxu0 }
 0x214   :  { %v8203_v48 = vpop.f32.mrf.mxu1 }
 0x217   :  { %v3103_v56 = vpop.f32.mrf.mxu0 }
 0x218   :  { %v3104_v57 = vadd.f32 %v3103_v56, %v3028_v54  ;;  %v3503_v58 = vpop.f32.mrf.mxu1 }
 0x219   :  { %v8182_v59 = vpop.f32.mrf.mxu0 }
 0x21a   :  { %v8217_v62 = vpop.f32.mrf.mxu1  ;;  %v3179_v19 = vadd.f32 %v3178_v16, %v3104_v57 }
 0x21d   :  { %v3255_v63 = vpop.f32.mrf.mxu0 }
 0x21e   :  { %v3256_v55 = vadd.f32 %v3255_v63, %v3179_v19  ;;  %v3654_v60 = vpop.f32.mrf.mxu1 }
 0x21f   :  { %v8196_v0 = vpop.f32.mrf.mxu0 }
 0x220   :  { %v3329_v1 = vadd.f32 %v3328_v52, %v3256_v55  ;;  %v8231_v2 = vpop.f32.mrf.mxu1 }
 0x222   :  { %3333 = vrot.lane.b32.xlu1 %v3329_v1, %s8609_s26 }
 0x223   :  { %v3422_v20 = vpop.f32.mrf.mxu0 }
 0x224   :  { %v3804_v3 = vpop.f32.mrf.mxu1  ;;  %v3504_v6 = vadd.f32 %v3503_v58, %v3422_v20 }
 0x225   :  { %v8210_v4 = vpop.f32.mrf.mxu0 }
 0x226   :  { %v8245_v5 = vpop.f32.mrf.mxu1 }
 0x228   :  { %v3579_v9 = vpop.f32.mrf.mxu0 }
 0x229   :  { %v3580_v45 = vadd.f32 %v3579_v9, %v3504_v6 }
 0x22a   :  { %v8224_v10 = vpop.f32.mrf.mxu0 }
 0x22b   :  { %v3655_v17 = vadd.f32 %v3654_v60, %v3580_v45 }
 0x22c   :  { %v3731_v18 = vpop.f32.mrf.mxu0 }
 0x22d   :  { %v3732_v21 = vadd.f32 %v3731_v18, %v3655_v17 }
 0x22e   :  { %v8238_v22 = vpop.f32.mrf.mxu0 }
 0x22f   :  { %v3805_v7 = vadd.f32 %v3804_v3, %v3732_v21  ;;  %v3977_v46 = vpop.f32.mrf.mxu1 }
 0x230   :  { %v3896_v23 = vpop.f32.mrf.mxu0 }
 0x231   :  { %3809 = vrot.lane.b32.xlu0 %v3805_v7, %s8610_s27  ;;  %v8259_v47 = vpop.f32.mrf.mxu1  ;;  %v3978_v25 = vadd.f32 %v3977_v46, %v3896_v23 }
 0x232   :  { %v8252_v11 = vpop.f32.mrf.mxu0 }
 0x235   :  { %v4053_v26 = vpop.f32.mrf.mxu0 }
 0x236   :  { %v4054_v27 = vadd.f32 %v4053_v26, %v3978_v25  ;;  %v4128_v61 = vpop.f32.mrf.mxu1 }
 0x237   :  { %v8266_v28 = vpop.f32.mrf.mxu0 }
 0x238   :  { %v4129_v29 = vadd.f32 %v4128_v61, %v4054_v27  ;;  %v8273_v12 = vpop.f32.mrf.mxu1 }
 0x23b   :  { %v4205_v13 = vpop.f32.mrf.mxu0 }
 0x23c   :  { %v4206_v24 = vadd.f32 %v4205_v13, %v4129_v29  ;;  %v4278_v30 = vpop.f32.mrf.mxu1 }
 0x23d   :  { %v8280_v31 = vpop.f32.mrf.mxu0 }
 0x23e   :  { %v4279_v14 = vadd.f32 %v4278_v30, %v4206_v24  ;;  %v8287_v32 = vpop.f32.mrf.mxu1 }
 0x240   :  { %4283 = vrot.lane.b32.xlu1 %v4279_v14, %s8603_s30  ;;  %v4453_v33 = vpop.f32.mrf.mxu1 }
 0x242   :  { %v8301_v15 = vpop.f32.mrf.mxu1 }
 0x244   :  { %v4604_v34 = vpop.f32.mrf.mxu1 }
 0x246   :  { %v8315_v35 = vpop.f32.mrf.mxu1 }
 0x248   :  { %v4372_v36 = vpop.f32.mrf.mxu0  ;;  %v4754_v37 = vpop.f32.mrf.mxu1 }
 0x249   :  { %v4454_v8 = vadd.f32 %v4453_v33, %v4372_v36 }
 0x24a   :  { %v8294_v38 = vpop.f32.mrf.mxu0  ;;  %v8329_v39 = vpop.f32.mrf.mxu1 }
 0x24e   :  { %v4529_v40 = vpop.f32.mrf.mxu0  ;;  %v4929_v41 = vpop.f32.mrf.mxu1 }
 0x24f   :  { %v4530_v42 = vadd.f32 %v4529_v40, %v4454_v8 }
 0x250   :  { %v8308_v43 = vpop.f32.mrf.mxu0  ;;  %v8343_v16 = vpop.f32.mrf.mxu1 }
 0x251   :  { %v4605_v44 = vadd.f32 %v4604_v34, %v4530_v42 }
 0x254   :  { %v4681_v49 = vpop.f32.mrf.mxu0  ;;  %v5080_v50 = vpop.f32.mrf.mxu1 }
 0x255   :  { %v4682_v51 = vadd.f32 %v4681_v49, %v4605_v44 }
 0x256   :  { %v8322_v52 = vpop.f32.mrf.mxu0  ;;  %v8357_v53 = vpop.f32.mrf.mxu1 }
 0x257   :  { %v4755_v48 = vadd.f32 %v4754_v37, %v4682_v51 }
 0x259   :  { %4759 = vrot.lane.b32.xlu0 %v4755_v48, %s8611_s28 }
 0x25a   :  { %v4848_v54 = vpop.f32.mrf.mxu0  ;;  %v5230_v56 = vpop.f32.mrf.mxu1 }
 0x25b   :  { %v4930_v59 = vadd.f32 %v4929_v41, %v4848_v54 }
 0x25c   :  { %v8336_v57 = vpop.f32.mrf.mxu0  ;;  %v8371_v58 = vpop.f32.mrf.mxu1 }
 0x260   :  { %v5005_v62 = vpop.f32.mrf.mxu0  ;;  %v5405_v19 = vpop.f32.mrf.mxu1 }
 0x261   :  { %v5006_v63 = vadd.f32 %v5005_v62, %v4930_v59 }
 0x262   :  { %v8350_v55 = vpop.f32.mrf.mxu0  ;;  %v8385_v60 = vpop.f32.mrf.mxu1 }
 0x263   :  { %v5081_v0 = vadd.f32 %v5080_v50, %v5006_v63 }
 0x266   :  { %v5157_v1 = vpop.f32.mrf.mxu0  ;;  %v5556_v2 = vpop.f32.mrf.mxu1 }
 0x267   :  { %v5158_v20 = vadd.f32 %v5157_v1, %v5081_v0 }
 0x268   :  { %v956_v3 = vpop.permute.xlu0 %955  ;;  %v8364_v4 = vpop.f32.mrf.mxu0 }
 0x269   :  { %959 = vst.msk [vmem:[%s9570_s2] sm:$0xf] %vm958_vm3, %v956_v3  ;;  %v1432_v5 = vpop.permute.xlu1 %1431  ;;  %v5231_v6 = vadd.f32 %v5230_v56, %v5158_v20  ;;  %v8399_v9 = vpop.f32.mrf.mxu1 }
 0x26a   :  { %1435 = vst.msk [vmem:[%s9570_s2] sm:$0xf] %vm1434_vm4, %v1432_v5 }
 0x26b   :  { %5235 = vrot.lane.b32.xlu1 %v5231_v6, %s8612_s5 }
 0x26c   :  { %v1908_v45 = vpop.permute.xlu0 %1907  ;;  %v5324_v10 = vpop.f32.mrf.mxu0 }
 0x26d   :  { %1911 = vst.msk [vmem:[%s9570_s2] sm:$0xf] %vm1910_vm5, %v1908_v45  ;;  %v5706_v17 = vpop.f32.mrf.mxu1  ;;  %v5406_v7 = vadd.f32 %v5405_v19, %v5324_v10 }
 0x26e   :  { %v8378_v18 = vpop.f32.mrf.mxu0 }
 0x26f   :  { %v8413_v21 = vpop.f32.mrf.mxu1  ;;  %v2382_v22 = vpop.permute.xlu1 %2381 }
 0x270   :  { %2385 = vst.msk [vmem:[%s9570_s2] sm:$0xf] %vm2384_vm6, %v2382_v22 }
 0x272   :  { %v5481_v46 = vpop.f32.mrf.mxu0  ;;  %v5879_v23 = vpop.f32.mrf.mxu1 }
 0x273   :  { %v5482_v47 = vadd.f32 %v5481_v46, %v5406_v7 }
 0x274   :  { %v8392_v25 = vpop.f32.mrf.mxu0  ;;  %v8427_v11 = vpop.f32.mrf.mxu1 }
 0x275   :  { %v5557_v26 = vadd.f32 %v5556_v2, %v5482_v47 }
 0x278   :  { %v5633_v27 = vpop.f32.mrf.mxu0  ;;  %v6030_v61 = vpop.f32.mrf.mxu1 }
 0x279   :  { %v5634_v28 = vadd.f32 %v5633_v27, %v5557_v26 }
 0x27a   :  { %v8406_v29 = vpop.f32.mrf.mxu0  ;;  %v8441_v12 = vpop.f32.mrf.mxu1 }
 0x27b   :  { %v5707_v13 = vadd.f32 %v5706_v17, %v5634_v28 }
 0x27d   :  { %5711 = vrot.lane.b32.xlu0 %v5707_v13, %s8613_s10 }
 0x27e   :  { %v5798_v24 = vpop.f32.mrf.mxu0  ;;  %v6180_v30 = vpop.f32.mrf.mxu1 }
 0x27f   :  { %v5880_v33 = vadd.f32 %v5879_v23, %v5798_v24 }
 0x280   :  { %v8420_v31 = vpop.f32.mrf.mxu0  ;;  %v8455_v14 = vpop.f32.mrf.mxu1 }
 0x281   :  { %v2858_v32 = vpop.permute.xlu0 %2857 }
 0x282   :  { %2861 = vst.msk [vmem:[%s9570_s2] sm:$0xf] %vm2860_vm7, %v2858_v32 }
 0x284   :  { %v5955_v15 = vpop.f32.mrf.mxu0  ;;  %v6355_v34 = vpop.f32.mrf.mxu1 }
 0x285   :  { %v5956_v35 = vadd.f32 %v5955_v15, %v5880_v33 }
 0x286   :  { %v8434_v36 = vpop.f32.mrf.mxu0  ;;  %v8469_v37 = vpop.f32.mrf.mxu1 }
 0x287   :  { %v6031_v38 = vadd.f32 %v6030_v61, %v5956_v35 }
 0x28a   :  { %v6107_v39 = vpop.f32.mrf.mxu0  ;;  %v6506_v8 = vpop.f32.mrf.mxu1 }
 0x28b   :  { %v6108_v40 = vadd.f32 %v6107_v39, %v6031_v38 }
 0x28c   :  { %v8448_v41 = vpop.f32.mrf.mxu0  ;;  %v8483_v42 = vpop.f32.mrf.mxu1 }
 0x28d   :  { %v6181_v43 = vadd.f32 %v6180_v30, %v6108_v40 }
 0x28f   :  { %6185 = vrot.lane.b32.xlu1 %v6181_v43, %s8602_s1  ;;  %s8614_s1 = smov 104  }
 0x290   :  { %v6274_v16 = vpop.f32.mrf.mxu0  ;;  %v6656_v44 = vpop.f32.mrf.mxu1 }
 0x291   :  { %v6356_v52 = vadd.f32 %v6355_v34, %v6274_v16 }
 0x292   :  { %v8462_v49 = vpop.f32.mrf.mxu0  ;;  %v8497_v50 = vpop.f32.mrf.mxu1 }
 0x294   :  { %v3334_v51 = vpop.permute.xlu1 %3333 }
 0x295   :  { %3337 = vst.msk [vmem:[%s9570_s2] sm:$0xf] %vm3336_vm8, %v3334_v51 }
 0x296   :  { %v6431_v53 = vpop.f32.mrf.mxu0  ;;  %v6831_v48 = vpop.f32.mrf.mxu1 }
 0x297   :  { %v6432_v54 = vadd.f32 %v6431_v53, %v6356_v52 }
 0x298   :  { %v8476_v56 = vpop.f32.mrf.mxu0  ;;  %v8511_v57 = vpop.f32.mrf.mxu1 }
 0x299   :  { %v6507_v58 = vadd.f32 %v6506_v8, %v6432_v54 }
 0x29c   :  { %v6583_v59 = vpop.f32.mrf.mxu0  ;;  %v6982_v62 = vpop.f32.mrf.mxu1 }
 0x29d   :  { %v6584_v19 = vadd.f32 %v6583_v59, %v6507_v58 }
 0x29e   :  { %v8490_v63 = vpop.f32.mrf.mxu0  ;;  %v8525_v55 = vpop.f32.mrf.mxu1 }
 0x29f   :  { %v6657_v60 = vadd.f32 %v6656_v44, %v6584_v19 }
 0x2a1   :  { %6661 = vrot.lane.b32.xlu0 %v6657_v60, %s8614_s1 }
 0x2a2   :  { %v6750_v0 = vpop.f32.mrf.mxu0  ;;  %v7132_v1 = vpop.f32.mrf.mxu1 }
 0x2a3   :  { %v3810_v2 = vpop.permute.xlu0 %3809  ;;  %v6832_v4 = vadd.f32 %v6831_v48, %v6750_v0 }
 0x2a4   :  { %v8504_v20 = vpop.f32.mrf.mxu0  ;;  %v8539_v3 = vpop.f32.mrf.mxu1  ;;  %3813 = vst.msk [vmem:[%s9570_s2] sm:$0xf] %vm3812_vm9, %v3810_v2 }
 0x2a8   :  { %v6907_v5 = vpop.f32.mrf.mxu0  ;;  %v7307_v6 = vpop.f32.mrf.mxu1 }
 0x2a9   :  { %v6908_v9 = vadd.f32 %v6907_v5, %v6832_v4 }
 0x2aa   :  { %v8518_v45 = vpop.f32.mrf.mxu0  ;;  %v8553_v10 = vpop.f32.mrf.mxu1 }
 0x2ab   :  { %v6983_v17 = vadd.f32 %v6982_v62, %v6908_v9 }
 0x2ae   :  { %v7059_v18 = vpop.f32.mrf.mxu0  ;;  %v7458_v21 = vpop.f32.mrf.mxu1 }
 0x2af   :  { %v7060_v22 = vadd.f32 %v7059_v18, %v6983_v17 }
 0x2b0   :  { %v8532_v7 = vpop.f32.mrf.mxu0  ;;  %v8567_v46 = vpop.f32.mrf.mxu1 }
 0x2b1   :  { %v7133_v23 = vadd.f32 %v7132_v1, %v7060_v22 }
 0x2b2   :  { %v4284_v47 = vpop.permute.xlu1 %4283 }
 0x2b3   :  { %7137 = vrot.lane.b32.xlu1 %v7133_v23, %s8599_s13  ;;  %4287 = vst.msk [vmem:[%s9570_s2] sm:$0xf] %vm4286_vm10, %v4284_v47 }
 0x2b4   :  { %v7226_v25 = vpop.f32.mrf.mxu0  ;;  %v7608_v11 = vpop.f32.mrf.mxu1 }
 0x2b5   :  { %v7308_v61 = vadd.f32 %v7307_v6, %v7226_v25 }
 0x2b6   :  { %v8546_v26 = vpop.f32.mrf.mxu0  ;;  %v8581_v27 = vpop.f32.mrf.mxu1 }
 0x2b8   :  { %v7383_v28 = vpop.f32.mrf.mxu0 }
 0x2b9   :  { %v7384_v29 = vadd.f32 %v7383_v28, %v7308_v61 }
 0x2ba   :  { %v8560_v12 = vpop.f32.mrf.mxu0 }
 0x2bb   :  { %v7459_v13 = vadd.f32 %v7458_v21, %v7384_v29 }
 0x2bc   :  { %v7535_v24 = vpop.f32.mrf.mxu0 }
 0x2bd   :  { %v7536_v30 = vadd.f32 %v7535_v24, %v7459_v13 }
 0x2be   :  { %v8574_v31 = vpop.f32.mrf.mxu0 }
 0x2bf   :  { %v7609_v14 = vadd.f32 %v7608_v11, %v7536_v30 }
 0x2c1   :  { %7613 = vrot.lane.b32.xlu0 %v7609_v14, %s8615_s20 }
 0x2cb   :  { %v4760_v32 = vpop.permute.xlu0 %4759 }
 0x2cc   :  { %4763 = vst.msk [vmem:[%s9570_s2] sm:$0xf] %vm4762_vm11, %v4760_v32 }
 0x2dd   :  { %v5236_v33 = vpop.permute.xlu1 %5235 }
 0x2de   :  { %5239 = vst.msk [vmem:[%s9570_s2] sm:$0xf] %vm5238_vm12, %v5236_v33 }
 0x2ef   :  { %v5712_v15 = vpop.permute.xlu0 %5711 }
 0x2f0   :  { %5715 = vst.msk [vmem:[%s9570_s2] sm:$0xf] %vm5714_vm13, %v5712_v15 }
 0x301   :  { %v6186_v34 = vpop.permute.xlu1 %6185 }
 0x302   :  { %6189 = vst.msk [vmem:[%s9570_s2] sm:$0xf] %vm6188_vm14, %v6186_v34 }
 0x313   :  { %v6662_v35 = vpop.permute.xlu0 %6661 }
 0x314   :  { %6665 = vst.msk [vmem:[%s9570_s2] sm:$0xf] %vm6664_vm15, %v6662_v35 }
 0x325   :  { %v7138_v36 = vpop.permute.xlu1 %7137 }
 0x326   :  { %7141 = vst.msk [vmem:[%s9570_s2] sm:$0xf] %vm7140_vm0, %v7138_v36 }
 0x333   :  { %v7614_v37 = vpop.permute.xlu0 %7613 }
 0x334   :  { %7617 = vst.msk [vmem:[%s9570_s2] sm:$0xf] %vm7616_vm1, %v7614_v37 }

</bundles_post_ra>
